<compile_context>
chip_gen: v7x
topology: tpu7x:2x2x1
jax: 0.10.0
libtpu: 0.0.40
codegen_flags: <defaults>
</compile_context>

<pallas_src>
import jax
import jax.numpy as jnp
from jax import lax
from jax.experimental import pallas as pl
from jax.experimental.pallas import tpu as pltpu


def mlp_kernel(x_ref,
               w1_ref, b1_ref,
               w2_ref, b2_ref,
               w3_ref, b3_ref,
               w4_ref, b4_ref,
               o_ref):
    # x_ref: (tile_n, C_in) bf16 -- raw batch-major tile (no wrapper transpose).
    # Layer 1: contract the channel axis of both operands: w1 @ x_tile^T
    #   (512, C_in) . (tile_n, C_in)^T -> (512, tile_n), f32 accumulate.
    h = lax.dot_general(
        w1_ref[...], x_ref[...],
        dimension_numbers=(((1,), (1,)), ((), ())),
        preferred_element_type=jnp.float32)
    # bf16 bias + ReLU (bf16 VPU path on v6e/v7x; halves elementwise traffic).
    h = jnp.maximum(h.astype(jnp.bfloat16) + b1_ref[...], 0.0)

    # Layer 2: (256, 512) @ (512, tile_n)
    h = jnp.dot(w2_ref[...], h, preferred_element_type=jnp.float32)
    h = jnp.maximum(h.astype(jnp.bfloat16) + b2_ref[...], 0.0)

    # Layer 3: (128, 256) @ (256, tile_n)
    h = jnp.dot(w3_ref[...], h, preferred_element_type=jnp.float32)
    h = jnp.maximum(h.astype(jnp.bfloat16) + b3_ref[...], 0.0)

    # Layer 4: out_features = 1.  VPU broadcast multiply + cross-sublane (XLU)
    # reduction in f32; the result is already the lane-dense (1, tile_n) row.
    out = jnp.sum(h * w4_ref[...], axis=0, keepdims=True) + b4_ref[...]
    o_ref[...] = out.astype(o_ref.dtype)


def classifier_forward(x, packed, *, tile_n=1024):
    """x: [N, C_in] float32.  packed: kernel-layout params (see pack_params)."""
    N, C_in = x.shape

    # Clamp the tile to the lane-rounded batch so small batches don't pad up
    # to a huge tile; keep it a multiple of 128 (lane width / v5e MXU width).
    n_lane = ((N + 127) // 128) * 128
    tile_n = max(128, min((tile_n // 128) * 128, n_lane))
    n_tiles = pl.cdiv(N, tile_n)
    n_pad = n_tiles * tile_n

    # bf16 cast fused with the (row) pad -- no HBM transpose round trip.
    x_b = x.astype(jnp.bfloat16)
    if n_pad != N:
        x_b = jnp.pad(x_b, ((0, n_pad - N), (0, 0)))

    def resident(arr):
        # Whole-array block with a constant index map: stays VMEM-resident,
        # not re-fetched on later grid steps.
        return pl.BlockSpec(arr.shape, lambda i: (0, 0))

    out_row = pl.pallas_call(
        mlp_kernel,
        out_shape=jax.ShapeDtypeStruct((1, n_pad), jnp.float32),
        grid_spec=pltpu.PrefetchScalarGridSpec(
            num_scalar_prefetch=0,
            grid=(n_tiles,),
            in_specs=[
                pl.BlockSpec((tile_n, C_in), lambda i: (i, 0)),   # x batch tile
                resident(packed["w1"]), resident(packed["b1"]),
                resident(packed["w2"]), resident(packed["b2"]),
                resident(packed["w3"]), resident(packed["b3"]),
                resident(packed["w4"]), resident(packed["b4"]),
            ],
            out_specs=pl.BlockSpec((1, tile_n), lambda i: (0, i)),
        ),
        compiler_params=pltpu.CompilerParams(
            dimension_semantics=("parallel",),   # v7x: shard tiles over 2 TCs
        ),
    )(x_b,
      packed["w1"], packed["b1"],
      packed["w2"], packed["b2"],
      packed["w3"], packed["b3"],
      packed["w4"], packed["b4"])

    return out_row[0, :N].reshape(N, 1).astype(x.dtype)


def init_params(key, in_channels, hidden=(512, 256, 128)):
    """Deterministic synthetic parameters in PyTorch layout: W (out, in), b (out,)."""
    dims = [in_channels, hidden[0], hidden[1], hidden[2], 1]
    params = {}
    for idx in range(4):
        fan_in, fan_out = dims[idx], dims[idx + 1]
        key, kw, kb = jax.random.split(key, 3)
        bound = 1.0 / jnp.sqrt(jnp.float32(fan_in))
        params[f"w{idx + 1}"] = jax.random.uniform(
            kw, (fan_out, fan_in), jnp.float32, -bound, bound)
        params[f"b{idx + 1}"] = jax.random.uniform(
            kb, (fan_out,), jnp.float32, -bound, bound)
    return params


def pack_params(params):
    """PyTorch-layout f32 params -> kernel layout (bf16 matmul weights/biases)."""
    return dict(
        w1=params["w1"].astype(jnp.bfloat16),                      # (512, C_in)
        b1=params["b1"].reshape(-1, 1).astype(jnp.bfloat16),       # (512, 1)
        w2=params["w2"].astype(jnp.bfloat16),                      # (256, 512)
        b2=params["b2"].reshape(-1, 1).astype(jnp.bfloat16),       # (256, 1)
        w3=params["w3"].astype(jnp.bfloat16),                      # (128, 256)
        b3=params["b3"].reshape(-1, 1).astype(jnp.bfloat16),       # (128, 1)
        w4=params["w4"].T.astype(jnp.float32),                     # (128, 1) f32
        b4=params["b4"].reshape(1, 1).astype(jnp.float32),         # (1, 1)  f32
    )


def reference_forward(x, params):
    """Pure-JAX f32 reference matching the PyTorch module."""
    h = jnp.maximum(x @ params["w1"].T + params["b1"], 0.0)
    h = jnp.maximum(h @ params["w2"].T + params["b2"], 0.0)
    h = jnp.maximum(h @ params["w3"].T + params["b3"], 0.0)
    return h @ params["w4"].T + params["b4"]


if __name__ == "__main__":
    key = jax.random.PRNGKey(0)
    k_x, k_p = jax.random.split(key)

    N, C_IN = 512, 32                 # small demo; tile_n=256 -> grid of 2
    x = jax.random.normal(k_x, (N, C_IN), jnp.float32)
    params = init_params(k_p, C_IN)
    packed = pack_params(params)

    out = classifier_forward(x, packed, tile_n=256)
    out = jax.block_until_ready(out)

    ref = reference_forward(x, params)
    assert out.shape == (N, 1)
    # bf16 matmul inputs/activations with f32 accumulate: relaxed tolerance
    # versus the pure-f32 reference.
    assert jnp.allclose(out, ref, atol=3e-2, rtol=3e-2), "mismatch vs reference"

    print("KERNEL_OK")
</pallas_src>

<mosaic_0001>
module attributes {stable_mosaic.version = 11 : i64} {
  func.func @mlp_kernel(%arg0: i32, %arg1: memref<256x32xbf16, #tpu.memory_space<vmem>>, %arg2: memref<512x32xbf16, #tpu.memory_space<vmem>>, %arg3: memref<512x1xbf16, #tpu.memory_space<vmem>>, %arg4: memref<256x512xbf16, #tpu.memory_space<vmem>>, %arg5: memref<256x1xbf16, #tpu.memory_space<vmem>>, %arg6: memref<128x256xbf16, #tpu.memory_space<vmem>>, %arg7: memref<128x1xbf16, #tpu.memory_space<vmem>>, %arg8: memref<128x1xf32, #tpu.memory_space<vmem>>, %arg9: memref<1x1xf32, #tpu.memory_space<vmem>>, %arg10: memref<1x256xf32, #tpu.memory_space<vmem>>) attributes {dimension_semantics = [#tpu.dimension_semantics<parallel>], iteration_bounds = array<i64: 2>, scalar_prefetch = 0 : i64, scratch_operands = 0 : i64, tpu.core_type = #tpu.core_type<tc>, window_params = [{transform_indices = @transform_0, window_bounds = array<i64: 256, 32>}, {pipeline_mode = #tpu.pipeline_mode<synchronous>, transform_indices = @transform_1, window_bounds = array<i64: 512, 32>}, {pipeline_mode = #tpu.pipeline_mode<synchronous>, transform_indices = @transform_2, window_bounds = array<i64: 512, 1>}, {pipeline_mode = #tpu.pipeline_mode<synchronous>, transform_indices = @transform_3, window_bounds = array<i64: 256, 512>}, {pipeline_mode = #tpu.pipeline_mode<synchronous>, transform_indices = @transform_4, window_bounds = array<i64: 256, 1>}, {pipeline_mode = #tpu.pipeline_mode<synchronous>, transform_indices = @transform_5, window_bounds = array<i64: 128, 256>}, {pipeline_mode = #tpu.pipeline_mode<synchronous>, transform_indices = @transform_6, window_bounds = array<i64: 128, 1>}, {pipeline_mode = #tpu.pipeline_mode<synchronous>, transform_indices = @transform_7, window_bounds = array<i64: 128, 1>}, {pipeline_mode = #tpu.pipeline_mode<synchronous>, transform_indices = @transform_8, window_bounds = array<i64: 1, 1>}, {transform_indices = @transform_9, window_bounds = array<i64: 1, 256>}]} {
    %c0 = arith.constant 0 : index
    %c0_0 = arith.constant 0 : index
    %0 = vector.load %arg2[%c0, %c0_0] : memref<512x32xbf16, #tpu.memory_space<vmem>>, vector<512x32xbf16>
    %c0_1 = arith.constant 0 : index
    %c0_2 = arith.constant 0 : index
    %1 = vector.load %arg1[%c0_1, %c0_2] : memref<256x32xbf16, #tpu.memory_space<vmem>>, vector<256x32xbf16>
    %cst = arith.constant dense<0.000000e+00> : vector<512x256xf32>
    %2 = tpu.matmul %0, %1, %cst {dimension_numbers = #tpu.dot_dimension_numbers<[1], [1], [0], [0], [0, 0, 1, 0], [], []>} : vector<512x32xbf16>, vector<256x32xbf16>, vector<512x256xf32> -> vector<512x256xf32>
    %3 = arith.truncf %2 : vector<512x256xf32> to vector<512x256xbf16>
    %c0_3 = arith.constant 0 : index
    %c0_4 = arith.constant 0 : index
    %4 = vector.load %arg3[%c0_3, %c0_4] : memref<512x1xbf16, #tpu.memory_space<vmem>>, vector<512x1xbf16>
    %5 = vector.broadcast %4 : vector<512x1xbf16> to vector<512x256xbf16>
    %6 = arith.addf %3, %5 : vector<512x256xbf16>
    %cst_5 = arith.constant 0.000000e+00 : bf16
    %7 = vector.broadcast %cst_5 : bf16 to vector<512x256xbf16>
    %8 = arith.maximumf %6, %7 : vector<512x256xbf16>
    %c0_6 = arith.constant 0 : index
    %c0_7 = arith.constant 0 : index
    %9 = vector.load %arg4[%c0_6, %c0_7] : memref<256x512xbf16, #tpu.memory_space<vmem>>, vector<256x512xbf16>
    %cst_8 = arith.constant dense<0.000000e+00> : vector<256x256xf32>
    %10 = tpu.matmul %9, %8, %cst_8 {dimension_numbers = #tpu.dot_dimension_numbers<[1], [0], [0], [1], [0, 0, 1, 1], [], []>} : vector<256x512xbf16>, vector<512x256xbf16>, vector<256x256xf32> -> vector<256x256xf32>
    %11 = arith.truncf %10 : vector<256x256xf32> to vector<256x256xbf16>
    %c0_9 = arith.constant 0 : index
    %c0_10 = arith.constant 0 : index
    %12 = vector.load %arg5[%c0_9, %c0_10] : memref<256x1xbf16, #tpu.memory_space<vmem>>, vector<256x1xbf16>
    %13 = vector.broadcast %12 : vector<256x1xbf16> to vector<256x256xbf16>
    %14 = arith.addf %11, %13 : vector<256x256xbf16>
    %cst_11 = arith.constant 0.000000e+00 : bf16
    %15 = vector.broadcast %cst_11 : bf16 to vector<256x256xbf16>
    %16 = arith.maximumf %14, %15 : vector<256x256xbf16>
    %c0_12 = arith.constant 0 : index
    %c0_13 = arith.constant 0 : index
    %17 = vector.load %arg6[%c0_12, %c0_13] : memref<128x256xbf16, #tpu.memory_space<vmem>>, vector<128x256xbf16>
    %cst_14 = arith.constant dense<0.000000e+00> : vector<128x256xf32>
    %18 = tpu.matmul %17, %16, %cst_14 {dimension_numbers = #tpu.dot_dimension_numbers<[1], [0], [0], [1], [0, 0, 1, 1], [], []>} : vector<128x256xbf16>, vector<256x256xbf16>, vector<128x256xf32> -> vector<128x256xf32>
    %19 = arith.truncf %18 : vector<128x256xf32> to vector<128x256xbf16>
    %c0_15 = arith.constant 0 : index
    %c0_16 = arith.constant 0 : index
    %20 = vector.load %arg7[%c0_15, %c0_16] : memref<128x1xbf16, #tpu.memory_space<vmem>>, vector<128x1xbf16>
    %21 = vector.broadcast %20 : vector<128x1xbf16> to vector<128x256xbf16>
    %22 = arith.addf %19, %21 : vector<128x256xbf16>
    %cst_17 = arith.constant 0.000000e+00 : bf16
    %23 = vector.broadcast %cst_17 : bf16 to vector<128x256xbf16>
    %24 = arith.maximumf %22, %23 : vector<128x256xbf16>
    %c0_18 = arith.constant 0 : index
    %c0_19 = arith.constant 0 : index
    %25 = vector.load %arg8[%c0_18, %c0_19] : memref<128x1xf32, #tpu.memory_space<vmem>>, vector<128x1xf32>
    %26 = arith.extf %24 : vector<128x256xbf16> to vector<128x256xf32>
    %27 = vector.broadcast %25 : vector<128x1xf32> to vector<128x256xf32>
    %28 = arith.mulf %26, %27 : vector<128x256xf32>
    %cst_20 = arith.constant dense<0.000000e+00> : vector<256xf32>
    %29 = vector.multi_reduction <add>, %28, %cst_20 [0] : vector<128x256xf32> to vector<256xf32>
    %30 = vector.shape_cast %29 : vector<256xf32> to vector<1x256xf32>
    %c0_21 = arith.constant 0 : index
    %c0_22 = arith.constant 0 : index
    %31 = vector.load %arg9[%c0_21, %c0_22] : memref<1x1xf32, #tpu.memory_space<vmem>>, vector<1x1xf32>
    %32 = vector.broadcast %31 : vector<1x1xf32> to vector<1x256xf32>
    %33 = arith.addf %30, %32 : vector<1x256xf32>
    %c0_23 = arith.constant 0 : index
    %c0_24 = arith.constant 0 : index
    %34 = vector.load %arg10[%c0_23, %c0_24] : memref<1x256xf32, #tpu.memory_space<vmem>>, vector<1x256xf32>
    tpu.vector_store %arg10[%c0_23, %c0_24], %33 {strides = array<i32>} : memref<1x256xf32, #tpu.memory_space<vmem>>, vector<1x256xf32>,
    return
  }
  func.func @transform_0(%arg0: i32) -> (i32, i32) {
    %c0_i32 = arith.constant 0 : i32
    %c0_i32_0 = arith.constant 0 : i32
    return %arg0, %c0_i32 : i32, i32
  }
  func.func @transform_1(%arg0: i32) -> (i32, i32) {
    %c0_i32 = arith.constant 0 : i32
    %c0_i32_0 = arith.constant 0 : i32
    %c0_i32_1 = arith.constant 0 : i32
    return %c0_i32, %c0_i32_0 : i32, i32
  }
  func.func @transform_2(%arg0: i32) -> (i32, i32) {
    %c0_i32 = arith.constant 0 : i32
    %c0_i32_0 = arith.constant 0 : i32
    %c0_i32_1 = arith.constant 0 : i32
    return %c0_i32, %c0_i32_0 : i32, i32
  }
  func.func @transform_3(%arg0: i32) -> (i32, i32) {
    %c0_i32 = arith.constant 0 : i32
    %c0_i32_0 = arith.constant 0 : i32
    %c0_i32_1 = arith.constant 0 : i32
    return %c0_i32, %c0_i32_0 : i32, i32
  }
  func.func @transform_4(%arg0: i32) -> (i32, i32) {
    %c0_i32 = arith.constant 0 : i32
    %c0_i32_0 = arith.constant 0 : i32
    %c0_i32_1 = arith.constant 0 : i32
    return %c0_i32, %c0_i32_0 : i32, i32
  }
  func.func @transform_5(%arg0: i32) -> (i32, i32) {
    %c0_i32 = arith.constant 0 : i32
    %c0_i32_0 = arith.constant 0 : i32
    %c0_i32_1 = arith.constant 0 : i32
    return %c0_i32, %c0_i32_0 : i32, i32
  }
  func.func @transform_6(%arg0: i32) -> (i32, i32) {
    %c0_i32 = arith.constant 0 : i32
    %c0_i32_0 = arith.constant 0 : i32
    %c0_i32_1 = arith.constant 0 : i32
    return %c0_i32, %c0_i32_0 : i32, i32
  }
  func.func @transform_7(%arg0: i32) -> (i32, i32) {
    %c0_i32 = arith.constant 0 : i32
    %c0_i32_0 = arith.constant 0 : i32
    %c0_i32_1 = arith.constant 0 : i32
    return %c0_i32, %c0_i32_0 : i32, i32
  }
  func.func @transform_8(%arg0: i32) -> (i32, i32) {
    %c0_i32 = arith.constant 0 : i32
    %c0_i32_0 = arith.constant 0 : i32
    %c0_i32_1 = arith.constant 0 : i32
    return %c0_i32, %c0_i32_0 : i32, i32
  }
  func.func @transform_9(%arg0: i32) -> (i32, i32) {
    %c0_i32 = arith.constant 0 : i32
    %c0_i32_0 = arith.constant 0 : i32
    return %c0_i32, %arg0 : i32, i32
  }
}

</mosaic_0001>

<bundles_post_ra>
// kernel: tpu_custom_call.1
= control target key start
LH: loop header
LB: loop body
LE: loop exit
PB: predicated region body
PF: predicated region fallthrough
CT: control target
= control target key end

     0   :  { %s6719_s0 = inlined_call_operand.vmem [shape: bf16[512,32], index: 0, kind: input, shape index: {}]   ;;  %s6720_s1 = inlined_call_operand.vmem [shape: bf16[512,32], index: 1, kind: input, shape index: {}]   ;;  %s6721_s2 = inlined_call_operand.vmem [shape: bf16[512,1], index: 2, kind: input, shape index: {}]   ;;  %s6722_s3 = inlined_call_operand.vmem [shape: bf16[256,512], index: 3, kind: input, shape index: {}]   ;;  %s6723_s4 = inlined_call_operand.vmem [shape: bf16[256,1], index: 4, kind: input, shape index: {}]   ;;  %s6724_s5 = inlined_call_operand.vmem [shape: bf16[128,256], index: 5, kind: input, shape index: {}]   ;;  %s6725_s6 = inlined_call_operand.vmem [shape: bf16[128,1], index: 6, kind: input, shape index: {}]   ;;  %s6726_s7 = inlined_call_operand.vmem [shape: f32[128,1], index: 7, kind: input, shape index: {}]   ;;  %s6727_s8 = inlined_call_operand.<no memory space> [shape: f32[1,1], index: 8, kind: input, shape index: {}]   ;;  %s6728_s9 = inlined_call_operand.hbm [shape: f32[1,512], index: 9, kind: output, shape index: {}]  }
   0x1   :  { %v14_v0 = vstv %s6727_s8 }
   0x2   :  { %15 = vst [vmem:[#allocation2] sm:$0x1] %v14_v0 }
   0x3   :  { %16 = vsyncpa [#allocation4], 0 }
   0x4   :  { %18 = vsyncpa [#allocation4 + $0x1], 0  ;;  %s5335_s11 = smov 0   ;;  %s5337_s12 = smov 0  }
   0x5   :  { %s5339_s13 = smov 0   ;;  %s5341_s14 = smov 0  }
   0x6 LB: > { %s4588_s8 = sadd.s32 4294967295, %s5276_s14   ;;  %s4589_s15 = sadd.s32 4294967294, %s5276_s14   ;;  %s5276_s14 = sphi %s5341_s14, %s6734_s14   ;;  %s5272_s13 = sphi %s5339_s13, %s6733_s13   ;;  %s5268_s12 = sphi %s5337_s12, %s6732_s12   ;;  %s5264_s11 = sphi %s5335_s11, %s6731_s11  }
   0x7   : > { %s5358_s16 = sadd.s32 1, %s5276_s14   ;;  %s225_s17 = sadd.s32 1, %s5272_s13 }
   0x8   : > { %s222_s18 = ssub.s32 %s5276_s14, %s5358_s16  ;;  %p235_p0 = scmp.ne.s32.totalorder %s5272_s13, %s5268_s12 }
   0x9   : > { %p223_p1 = scmp.eq.s32.totalorder %s222_s18, 0  ;;  %p236_p2 = scmp.eq.s32.totalorder %s4588_s8, 1 }
   0xa   : > { %p241_p3 = scmp.ne.s32.totalorder %s5268_s12, %s5264_s11  ;;  %p242_p4 = scmp.eq.s32.totalorder %s4589_s15, 1 }
   0xb   : > { %s5368_s19 = scalar_select %p223_p1, %s5272_s13, %s225_s17  }
   0xc   : > { %p5370_p5 = por %p236_p2, %p235_p0  ;;  %p5374_p6 = por %p242_p4, %p241_p3 }
   0xd   : > { %p4592_p7 = scmp.ge.s32.totalorder %s5276_s14, 1  ;;  %p293_p8 = scmp.lt.s32.totalorder %s5276_s14, 3 }
   0xf   : > { %p294_p9 = pnand %p4592_p7, %p293_p8 }
  0x10   : > { %v1237_v1 = vld [vmem:[%s6721_s2 + $0x8] sm:$0xf] (!%p294_p9)  ;;  %v1235_v2 = vld [vmem:[%s6721_s2] sm:$0xf] (!%p294_p9)  ;;  %s5386_s26 = sshll.u32 (!%p294_p9), %s4588_s8, 5  ;;  %v5278_v3 = vmov (!%p294_p9), 0  }
  0x11   : > { %297 = sbr.rel (%p294_p9) target bundleno = 1215 (0x4bf), region = 56  ;;  %5045 = vset.pattern.permute.xlu1 (!%p294_p9), %v5278_v3  ;;  %5044 = vset.pattern.permute.xlu0 (!%p294_p9), %v5278_v3  ;;  %p330_p10 = scmp.lt.s32.totalorder (!%p294_p9), %s5386_s26, 63  ;;  %v1238_v4 = vld [vmem:[%s6721_s2 + $0xc] sm:$0xf] (!%p294_p9)  ;;  %v1236_v5 = vld [vmem:[%s6721_s2 + $0x4] sm:$0xf] (!%p294_p9) }
  0x12   : > { %1325 = vperm.xlu1 (!%p294_p9), %5045, %v1237_v1   ;;  %1301 = vperm.xlu0 (!%p294_p9), %5044, %v1235_v2   ;;  %v5401_v6 = vld [vmem:[%s6720_s1] sm:$0xff] (!%p294_p9)   ;;  %vm673_vm0 = vcmask (!%p294_p9), 261120   ;;  %v1240_v7 = vld [vmem:[%s6721_s2 + $0x14] sm:$0xf] (!%p294_p9)  ;;  %v1239_v8 = vld [vmem:[%s6721_s2 + $0x10] sm:$0xf] (!%p294_p9)  ;;  %s6677_s23 = scalar_lea.hbm (!%p294_p9), %s6728_s9, %s5386_s26 }
  0x13   : > { %4834 = vmatprep.mubr.msk.bf16.mxu0 (!%p294_p9), %vm673_vm0, %v5401_v6  ;;  %v1242_v11 = vld [vmem:[%s6721_s2 + $0x1c] sm:$0xf] (!%p294_p9)  ;;  %v1241_v12 = vld [vmem:[%s6721_s2 + $0x18] sm:$0xf] (!%p294_p9)  ;;  %v1244_v16 = vld [vmem:[%s6721_s2 + $0x24] sm:$0xf] (!%p294_p9) }
  0x14   : > { %v1243_v17 = vld [vmem:[%s6721_s2 + $0x20] sm:$0xf] (!%p294_p9)  ;;  %v1246_v20 = vld [vmem:[%s6721_s2 + $0x2c] sm:$0xf] (!%p294_p9)  ;;  %v1245_v21 = vld [vmem:[%s6721_s2 + $0x28] sm:$0xf] (!%p294_p9) }
  0x15   : > { %v1248_v23 = vld [vmem:[%s6721_s2 + $0x34] sm:$0xf] (!%p294_p9)  ;;  %v1247_v24 = vld [vmem:[%s6721_s2 + $0x30] sm:$0xf] (!%p294_p9)  ;;  %v1250_v27 = vld [vmem:[%s6721_s2 + $0x3c] sm:$0xf] (!%p294_p9) }
  0x16   : > { %1337 = vperm.xlu1 (!%p294_p9), %5045, %v1238_v4   ;;  %1313 = vperm.xlu0 (!%p294_p9), %5044, %v1236_v5   ;;  %v1249_v28 = vld [vmem:[%s6721_s2 + $0x38] sm:$0xf] (!%p294_p9)  ;;  %v1252_v30 = vld [vmem:[%s6721_s2 + $0x44] sm:$0xf] (!%p294_p9)  ;;  %v1251_v31 = vld [vmem:[%s6721_s2 + $0x40] sm:$0xf] (!%p294_p9) }
  0x17   : > { %v1254_v34 = vld [vmem:[%s6721_s2 + $0x4c] sm:$0xf] (!%p294_p9)  ;;  %v1253_v35 = vld [vmem:[%s6721_s2 + $0x48] sm:$0xf] (!%p294_p9)  ;;  %v1256_v37 = vld [vmem:[%s6721_s2 + $0x54] sm:$0xf] (!%p294_p9) }
  0x18   : > { %s331_s10 = scalar_select %p330_p10, %s5386_s26, 63  ;;  %v1255_v38 = vld [vmem:[%s6721_s2 + $0x50] sm:$0xf]  ;;  %v1258_v41 = vld [vmem:[%s6721_s2 + $0x5c] sm:$0xf]  ;;  %v5063_v1 = vld [vmem:[%s6720_s1 + $0x8] sm:$0xff]  }
  0x19   : > { %v1257_v42 = vld [vmem:[%s6721_s2 + $0x58] sm:$0xf]  ;;  %v1260_v44 = vld [vmem:[%s6721_s2 + $0x64] sm:$0xf]  ;;  %v1259_v45 = vld [vmem:[%s6721_s2 + $0x60] sm:$0xf] }
  0x1a   : > { %s4595_s17 = sshll.u32 %s331_s10, 2  ;;  %1361 = vperm.xlu1 %5045, %v1240_v7   ;;  %1349 = vperm.xlu0 %5044, %v1239_v8   ;;  %v1262_v48 = vld [vmem:[%s6721_s2 + $0x6c] sm:$0xf]  ;;  %v1261_v49 = vld [vmem:[%s6721_s2 + $0x68] sm:$0xf]  ;;  %v5064_v7 = vld [vmem:[%s6720_s1 + $0x10] sm:$0xff]  }
  0x1b   : > { %s5412_s28 = scalar_lea.vmem %s6719_s0, %s4595_s17  ;;  %v1264_v51 = vld [vmem:[%s6721_s2 + $0x74] sm:$0xf]  ;;  %v1263_v52 = vld [vmem:[%s6721_s2 + $0x70] sm:$0xf]  ;;  %v1266_v55 = vld [vmem:[%s6721_s2 + $0x7c] sm:$0xf] }
  0x1c   : > { %v5046_v9 = vld [vmem:[%s5412_s28 + $0x40] sm:$0xff]   ;;  %v5048_v13 = vld [vmem:[%s5412_s28 + $0x48] sm:$0xff]   ;;  %v5050_v19 = vld [vmem:[%s5412_s28 + $0x50] sm:$0xff]   ;;  %s326_s10 = sand.u32 1, %s5268_s12   ;;  %s5281_s25 = smov [#allocation3]  }
  0x1d   : > { %v5047_v10 = vld [vmem:[%s5412_s28] sm:$0xff]   ;;  %4994 = vmatprep.subr.msk.bf16.mxu0 %vm673_vm0, %v5046_v9  ;;  %v5049_v15 = vld [vmem:[%s5412_s28 + $0x8] sm:$0xff]   ;;  %v5051_v22 = vld [vmem:[%s5412_s28 + $0x10] sm:$0xff]   ;;  %s4593_s8 = sshll.u32 %s326_s10, 1  ;;  %s4516_s24 = scalar_lea.sflag [#allocation4], %s326_s10 }
  0x1e   : > { %v771_v14 = vsel %vm673_vm0, %v5047_v10, 0  ;;  %1385 = vperm.xlu1 %5045, %v1242_v11   ;;  %1373 = vperm.xlu0 %5044, %v1241_v12   ;;  %v774_v18 = vsel %vm673_vm0, %v5049_v15, 0  ;;  %v777_v25 = vsel %vm673_vm0, %v5051_v22, 0  ;;  %v5052_v26 = vld [vmem:[%s5412_s28 + $0x58] sm:$0xff]   ;;  %v5054_v33 = vld [vmem:[%s5412_s28 + $0x60] sm:$0xff]   ;;  %v5056_v40 = vld [vmem:[%s5412_s28 + $0x68] sm:$0xff]  }
  0x1f   : > { %4819 = vmatpush3.bf16.xpose.msra.mxu0 %v771_v14  ;;  %v5053_v29 = vld [vmem:[%s5412_s28 + $0x18] sm:$0xff]   ;;  %v5055_v36 = vld [vmem:[%s5412_s28 + $0x20] sm:$0xff]   ;;  %v5057_v43 = vld [vmem:[%s5412_s28 + $0x28] sm:$0xff]   ;;  %s328_s15 = scalar_lea.vmem [#allocation3], %s4593_s8  ;;  %s5218_s27 = sshll.u32 %s5281_s25, 4  ;;  %s5219_s27 = int_to_ptr.vmem [resolvable:$false] %s5218_s27 }
  0x20   : > { %4995 = vmatprep.subr.msk.bf16.mxu0 %vm673_vm0, %v5048_v13  ;;  %v780_v32 = vsel %vm673_vm0, %v5053_v29, 0  ;;  %v783_v39 = vsel %vm673_vm0, %v5055_v36, 0  ;;  %v786_v46 = vsel %vm673_vm0, %v5057_v43, 0  ;;  %v5058_v47 = vld [vmem:[%s5412_s28 + $0x70] sm:$0xff]   ;;  %v5060_v54 = vld [vmem:[%s5412_s28 + $0x78] sm:$0xff]   ;;  %v5067_v22 = vld [vmem:[%s6720_s1 + $0x28] sm:$0xff]  }
  0x21   : > { %v5059_v50 = vld [vmem:[%s5412_s28 + $0x30] sm:$0xff]   ;;  %v1265_v56 = vld [vmem:[%s6721_s2 + $0x78] sm:$0xf]  ;;  %v1268_v58 = vld [vmem:[%s6721_s2 + $0x84] sm:$0xf]  ;;  %s4530_s17 = sshll.u32 %s328_s15, 4  ;;  %s6679_s17 = int_to_ptr.vmem [resolvable:$true] %s4530_s17 }
  0x22   : > { %1409 = vperm.xlu1 %5045, %v1244_v16   ;;  %1397 = vperm.xlu0 %5044, %v1243_v17   ;;  %v789_v53 = vsel %vm673_vm0, %v5059_v50, 0  ;;  %v5061_v57 = vld [vmem:[%s5412_s28 + $0x38] sm:$0xff]   ;;  %v1267_v59 = vld [vmem:[%s6721_s2 + $0x80] sm:$0xf]  ;;  %v1270_v61 = vld [vmem:[%s6721_s2 + $0x8c] sm:$0xf]  ;;  %p5221_p0 = scmp.lt.s32.totalorder %s6679_s17, %s5219_s27 }
  0x23   : > { %v792_v60 = vsel %vm673_vm0, %v5061_v57, 0  ;;  %v1269_v62 = vld [vmem:[%s6721_s2 + $0x88] sm:$0xf]  ;;  %v1272_v63 = vld [vmem:[%s6721_s2 + $0x94] sm:$0xf]  ;;  %v5065_v12 = vld [vmem:[%s6720_s1 + $0x18] sm:$0xff]  }
  0x24   : > { %v1271_v0 = vld [vmem:[%s6721_s2 + $0x90] sm:$0xf]  ;;  %v1274_v2 = vld [vmem:[%s6721_s2 + $0x9c] sm:$0xf]  ;;  %v1273_v4 = vld [vmem:[%s6721_s2 + $0x98] sm:$0xf] }
  0x25   : > { %v1276_v5 = vld [vmem:[%s6721_s2 + $0xa4] sm:$0xf]  ;;  %v1278_v8 = vld [vmem:[%s6721_s2 + $0xac] sm:$0xf]  ;;  %v1277_v9 = vld [vmem:[%s6721_s2 + $0xa8] sm:$0xf] }
  0x26   : > { %1433 = vperm.xlu1 %5045, %v1246_v20   ;;  %1421 = vperm.xlu0 %5044, %v1245_v21   ;;  %v1280_v10 = vld [vmem:[%s6721_s2 + $0xb4] sm:$0xf]  ;;  %v1279_v11 = vld [vmem:[%s6721_s2 + $0xb0] sm:$0xf]  ;;  %v1282_v13 = vld [vmem:[%s6721_s2 + $0xbc] sm:$0xf] }
  0x27   : > { %4821 = vmatpush3.bf16.xpose.msra.mxu0 %v774_v18  ;;  %v1281_v14 = vld [vmem:[%s6721_s2 + $0xb8] sm:$0xf]  ;;  %v1284_v15 = vld [vmem:[%s6721_s2 + $0xc4] sm:$0xf]  ;;  %v1283_v16 = vld [vmem:[%s6721_s2 + $0xc0] sm:$0xf] }
  0x28   : > { %4996 = vmatprep.subr.msk.bf16.mxu0 %vm673_vm0, %v5050_v19  ;;  %v5066_v17 = vld [vmem:[%s6720_s1 + $0x20] sm:$0xff]   ;;  %v1286_v18 = vld [vmem:[%s6721_s2 + $0xcc] sm:$0xf]  ;;  %v1285_v19 = vld [vmem:[%s6721_s2 + $0xc8] sm:$0xf]  ;;  %s5214_s28 = scalar_lea.vmem %s6679_s17, 32 }
  0x29   : > { %v1288_v20 = vld [vmem:[%s6721_s2 + $0xd4] sm:$0xf]  ;;  %v1287_v21 = vld [vmem:[%s6721_s2 + $0xd0] sm:$0xf]  ;;  %v1293_v29 = vld [vmem:[%s6721_s2 + $0xe8] sm:$0xf]  ;;  %p5215_p11 = scmp.ne.s32.totalorder %s6679_s17, %s5214_s28 }
  0x2a   : > { %1457 = vperm.xlu1 %5045, %v1248_v23   ;;  %1445 = vperm.xlu0 %5044, %v1247_v24   ;;  %v1290_v23 = vld [vmem:[%s6721_s2 + $0xdc] sm:$0xf]  ;;  %v1289_v24 = vld [vmem:[%s6721_s2 + $0xd8] sm:$0xf]  ;;  %v3189_v36 = vld [vmem:[%s6723_s4] sm:$0xf] }
  0x2b   : > { %v3196_v43 = vld [vmem:[%s6723_s4 + $0x1c] sm:$0xf]  ;;  %v3202_v50 = vld [vmem:[%s6723_s4 + $0x34] sm:$0xf]  ;;  %v5074_v57 = vld [vmem:[%s6720_s1 + $0x60] sm:$0xff]   ;;  %p5216_p12 = pnand %p5215_p11, %p5370_p5  ;;  %s5220_s29 = scalar_lea.vmem %s5219_s27, 64 }
  0x2c   : > { %p5222_p1 = scmp.lt.s32.totalorder %s5220_s29, %s5214_s28 }
  0x2d   : > { %p5217_p13 = pneg %p5216_p12 }
  0x2e   : > { %1481 = vperm.xlu1 %5045, %v1250_v27   ;;  %1469 = vperm.xlu0 %5044, %v1249_v28   ;;  %v5068_v27 = vld [vmem:[%s6720_s1 + $0x30] sm:$0xff]   ;;  %v1294_v28 = vld [vmem:[%s6721_s2 + $0xec] sm:$0xf]  ;;  %p5223_p2 = por %p5222_p1, %p5221_p0 }
  0x2f   : > { %4823 = vmatpush3.bf16.xpose.msra.mxu0 %v777_v25  ;;  %v1292_v25 = vld [vmem:[%s6721_s2 + $0xe4] sm:$0xf] }
  0x30   : > { %4997 = vmatprep.subr.msk.bf16.mxu0 %vm673_vm0, %v5052_v26  ;;  %v1291_v26 = vld [vmem:[%s6721_s2 + $0xe0] sm:$0xf]  ;;  %p5224_p3 = pnand %p5223_p2, %p5217_p13 }
  0x32   : > { %1505 = vperm.xlu1 %5045, %v1252_v30   ;;  %1493 = vperm.xlu0 %5044, %v1251_v31   ;;  %v1296_v30 = vld [vmem:[%s6721_s2 + $0xf4] sm:$0xf]  ;;  %v1295_v31 = vld [vmem:[%s6721_s2 + $0xf0] sm:$0xf] }
  0x36   : > { %1529 = vperm.xlu1 %5045, %v1254_v34   ;;  %1517 = vperm.xlu0 %5044, %v1253_v35   ;;  %v1297_v34 = vld [vmem:[%s6721_s2 + $0xf8] sm:$0xf]  ;;  %v3190_v35 = vld [vmem:[%s6723_s4 + $0x4] sm:$0xf] }
  0x37   : > { %4825 = vmatpush3.bf16.xpose.msra.mxu0 %v780_v32  ;;  %v5069_v32 = vld [vmem:[%s6720_s1 + $0x38] sm:$0xff]  }
  0x38   : > { %4998 = vmatprep.subr.msk.bf16.mxu0 %vm673_vm0, %v5054_v33  ;;  %v1298_v33 = vld [vmem:[%s6721_s2 + $0xfc] sm:$0xf] }
  0x3a   : > { %1553 = vperm.xlu1 %5045, %v1256_v37   ;;  %1541 = vperm.xlu0 %5044, %v1255_v38   ;;  %v5070_v37 = vld [vmem:[%s6720_s1 + $0x40] sm:$0xff]   ;;  %v3192_v38 = vld [vmem:[%s6723_s4 + $0xc] sm:$0xf] }
  0x3e   : > { %1577 = vperm.xlu1 %5045, %v1258_v41   ;;  %1565 = vperm.xlu0 %5044, %v1257_v42   ;;  %v3193_v41 = vld [vmem:[%s6723_s4 + $0x10] sm:$0xf]  ;;  %v5071_v42 = vld [vmem:[%s6720_s1 + $0x48] sm:$0xff]  }
  0x3f   : > { %4827 = vmatpush3.bf16.xpose.msra.mxu0 %v783_v39  ;;  %v3191_v39 = vld [vmem:[%s6723_s4 + $0x8] sm:$0xf] }
  0x40   : > { %4999 = vmatprep.subr.msk.bf16.mxu0 %vm673_vm0, %v5056_v40  ;;  %v3194_v40 = vld [vmem:[%s6723_s4 + $0x14] sm:$0xf] }
  0x42   : > { %1601 = vperm.xlu1 %5045, %v1260_v44   ;;  %1589 = vperm.xlu0 %5044, %v1259_v45   ;;  %v3195_v44 = vld [vmem:[%s6723_s4 + $0x18] sm:$0xf]  ;;  %v3198_v45 = vld [vmem:[%s6723_s4 + $0x24] sm:$0xf] }
  0x46   : > { %1625 = vperm.xlu1 %5045, %v1262_v48   ;;  %1613 = vperm.xlu0 %5044, %v1261_v49   ;;  %v3200_v48 = vld [vmem:[%s6723_s4 + $0x2c] sm:$0xf]  ;;  %v3199_v49 = vld [vmem:[%s6723_s4 + $0x28] sm:$0xf] }
  0x47   : > { %4829 = vmatpush3.bf16.xpose.msra.mxu0 %v786_v46  ;;  %v3197_v46 = vld [vmem:[%s6723_s4 + $0x20] sm:$0xf] }
  0x48   : > { %5000 = vmatprep.subr.msk.bf16.mxu0 %vm673_vm0, %v5058_v47  ;;  %v5072_v47 = vld [vmem:[%s6720_s1 + $0x50] sm:$0xff]  }
  0x4a   : > { %1649 = vperm.xlu1 %5045, %v1264_v51   ;;  %1637 = vperm.xlu0 %5044, %v1263_v52   ;;  %v3201_v51 = vld [vmem:[%s6723_s4 + $0x30] sm:$0xf]  ;;  %v5073_v52 = vld [vmem:[%s6720_s1 + $0x58] sm:$0xff]  }
  0x4e   : > { %1673 = vperm.xlu1 %5045, %v1266_v55   ;;  %1661 = vperm.xlu0 %5044, %v1265_v56   ;;  %v3206_v55 = vld [vmem:[%s6723_s4 + $0x44] sm:$0xf]  ;;  %v3205_v56 = vld [vmem:[%s6723_s4 + $0x40] sm:$0xf] }
  0x4f   : > { %4831 = vmatpush3.bf16.xpose.msra.mxu0 %v789_v53  ;;  %v3204_v53 = vld [vmem:[%s6723_s4 + $0x3c] sm:$0xf] }
  0x50   : > { %5001 = vmatprep.subr.msk.bf16.mxu0 %vm673_vm0, %v5060_v54  ;;  %v3203_v54 = vld [vmem:[%s6723_s4 + $0x38] sm:$0xf] }
  0x52   : > { %1697 = vperm.xlu1 %5045, %v1268_v58   ;;  %1685 = vperm.xlu0 %5044, %v1267_v59   ;;  %v3208_v58 = vld [vmem:[%s6723_s4 + $0x4c] sm:$0xf]  ;;  %v3207_v59 = vld [vmem:[%s6723_s4 + $0x48] sm:$0xf] }
  0x56   : > { %1721 = vperm.xlu1 %5045, %v1270_v61   ;;  %1709 = vperm.xlu0 %5044, %v1269_v62   ;;  %v3209_v61 = vld [vmem:[%s6723_s4 + $0x50] sm:$0xf] }
  0x57   : > { %4833 = vmatpush3.bf16.xpose.msra.mxu0 %v792_v60  ;;  %v3210_v60 = vld [vmem:[%s6723_s4 + $0x54] sm:$0xf] }
  0x5a   : > { %1745 = vperm.xlu1 %5045, %v1272_v63   ;;  %1733 = vperm.xlu0 %5044, %v1271_v0   ;;  %v5075_v63 = vld [vmem:[%s6720_s1 + $0x68] sm:$0xff]  }
  0x5e   : > { %4835 = vmatmul.mubr.msk.bf16.vlgmr.msra.gmra.mrb[0].mxu0 %vm673_vm0, %v5401_v6  ;;  %1769 = vperm.xlu1 %5045, %v1274_v2   ;;  %v1275_v6 = vld [vmem:[%s6721_s2 + $0xa0] sm:$0xf]  ;;  %v3211_v2 = vld [vmem:[%s6723_s4 + $0x58] sm:$0xf] }
  0x5f   : > { %4836 = vmatprep.mubr.msk.bf16.mxu0 %vm673_vm0, %v5063_v1  ;;  %1757 = vperm.xlu0 %5044, %v1273_v4  }
  0x62   : > { %1793 = vperm.xlu1 %5045, %v1276_v5   ;;  %v3214_v5 = vld [vmem:[%s6723_s4 + $0x64] sm:$0xf] }
  0x63   : > { %1781 = vperm.xlu0 %5044, %v1275_v6   ;;  %v3213_v6 = vld [vmem:[%s6723_s4 + $0x60] sm:$0xf] }
  0x66   : > { %4837 = vmatmul.mubr.msk.bf16.gmra.mrb[4].mxu0 %vm673_vm0, %v5063_v1  ;;  %1817 = vperm.xlu1 %5045, %v1278_v8   ;;  %v3212_v1 = vld [vmem:[%s6723_s4 + $0x5c] sm:$0xf]  ;;  %v5076_v8 = vld [vmem:[%s6720_s1 + $0x70] sm:$0xff]  }
  0x67   : > { %4838 = vmatprep.mubr.msk.bf16.mxu0 %vm673_vm0, %v5064_v7  ;;  %1805 = vperm.xlu0 %5044, %v1277_v9   ;;  %v3216_v9 = vld [vmem:[%s6723_s4 + $0x6c] sm:$0xf] }
  0x6a   : > { %1841 = vperm.xlu1 %5045, %v1280_v10   ;;  %v3215_v10 = vld [vmem:[%s6723_s4 + $0x68] sm:$0xf] }
  0x6b   : > { %1829 = vperm.xlu0 %5044, %v1279_v11  }
  0x6e   : > { %4839 = vmatmul.mubr.msk.bf16.gmra.mrb[8].mxu0 %vm673_vm0, %v5064_v7  ;;  %1865 = vperm.xlu1 %5045, %v1282_v13   ;;  %v3218_v13 = vld [vmem:[%s6723_s4 + $0x74] sm:$0xf] }
  0x6f   : > { %4840 = vmatprep.mubr.msk.bf16.mxu0 %vm673_vm0, %v5065_v12  ;;  %1853 = vperm.xlu0 %5044, %v1281_v14   ;;  %v3217_v14 = vld [vmem:[%s6723_s4 + $0x70] sm:$0xf] }
  0x72   : > { %1889 = vperm.xlu1 %5045, %v1284_v15   ;;  %v5077_v15 = vld [vmem:[%s6720_s1 + $0x78] sm:$0xff]  }
  0x73   : > { %1877 = vperm.xlu0 %5044, %v1283_v16  }
  0x76   : > { %4841 = vmatmul.mubr.msk.bf16.gmra.mrb[12].mxu0 %vm673_vm0, %v5065_v12  ;;  %1913 = vperm.xlu1 %5045, %v1286_v18   ;;  %v3219_v18 = vld [vmem:[%s6723_s4 + $0x78] sm:$0xf] }
  0x77   : > { %4842 = vmatprep.mubr.msk.bf16.mxu0 %vm673_vm0, %v5066_v17  ;;  %1901 = vperm.xlu0 %5044, %v1285_v19  }
  0x7a   : > { %1937 = vperm.xlu1 %5045, %v1288_v20   ;;  %v3991_v20 = vld [vmem:[%s6725_s6 + $0x4] sm:$0xf] }
  0x7b   : > { %1925 = vperm.xlu0 %5044, %v1287_v21   ;;  %v3990_v21 = vld [vmem:[%s6725_s6] sm:$0xf] }
  0x7e   : > { %4843 = vmatmul.mubr.msk.bf16.gmra.mrb[16].mxu0 %vm673_vm0, %v5066_v17  ;;  %1961 = vperm.xlu1 %5045, %v1290_v23   ;;  %v3220_v17 = vld [vmem:[%s6723_s4 + $0x7c] sm:$0xf]  ;;  %v5078_v23 = vld [vmem:[%s6720_s1 + $0x80] sm:$0xff]  }
  0x7f   : > { %4844 = vmatprep.mubr.msk.bf16.mxu0 %vm673_vm0, %v5067_v22  ;;  %1949 = vperm.xlu0 %5044, %v1289_v24  }
  0x82   : > { %1985 = vperm.xlu1 %5045, %v1292_v25   ;;  %v3993_v25 = vld [vmem:[%s6725_s6 + $0xc] sm:$0xf] }
  0x83   : > { %1973 = vperm.xlu0 %5044, %v1291_v26   ;;  %v3992_v26 = vld [vmem:[%s6725_s6 + $0x8] sm:$0xf] }
  0x86   : > { %4845 = vmatmul.mubr.msk.bf16.gmra.mrb[20].mxu0 %vm673_vm0, %v5067_v22  ;;  %2009 = vperm.xlu1 %5045, %v1294_v28   ;;  %v3995_v28 = vld [vmem:[%s6725_s6 + $0x14] sm:$0xf] }
  0x87   : > { %4846 = vmatprep.mubr.msk.bf16.mxu0 %vm673_vm0, %v5068_v27  ;;  %1997 = vperm.xlu0 %5044, %v1293_v29   ;;  %v3994_v29 = vld [vmem:[%s6725_s6 + $0x10] sm:$0xf] }
  0x8a   : > { %2033 = vperm.xlu1 %5045, %v1296_v30  }
  0x8b   : > { %2021 = vperm.xlu0 %5044, %v1295_v31   ;;  %v5079_v31 = vld [vmem:[%s6720_s1 + $0x88] sm:$0xff]  }
  0x8e   : > { %4847 = vmatmul.mubr.msk.bf16.gmra.mrb[24].mxu0 %vm673_vm0, %v5068_v27  ;;  %2057 = vperm.xlu1 %5045, %v1298_v33   ;;  %v3996_v33 = vld [vmem:[%s6725_s6 + $0x18] sm:$0xf] }
  0x8f   : > { %4848 = vmatprep.mubr.msk.bf16.mxu0 %vm673_vm0, %v5069_v32  ;;  %2045 = vperm.xlu0 %5044, %v1297_v34  }
  0x91   : > { %v5749_v62 = vpop.permute.xlu0 %1301  ;;  %v5754_v0 = vpop.permute.xlu1 %1325 }
  0x92   : > { %3235 = vperm.xlu1 %5045, %v3190_v35  }
  0x93   : > { %3223 = vperm.xlu0 %5044, %v3189_v36   ;;  %v4279_v36 = vld [vmem:[%s6726_s7 + $0x8] sm:$0xff] }
  0x95   : > { %v5764_v4 = vpop.permute.xlu0 %1313  ;;  %v5772_v7 = vpop.permute.xlu1 %1337 }
  0x96   : > { %4849 = vmatmul.mubr.msk.bf16.gmra.mrb[28].mxu0 %vm673_vm0, %v5069_v32  ;;  %3259 = vperm.xlu1 %5045, %v3192_v38   ;;  %v3997_v32 = vld [vmem:[%s6725_s6 + $0x1c] sm:$0xf]  ;;  %v5080_v38 = vld [vmem:[%s6720_s1 + $0x90] sm:$0xff]  }
  0x97   : > { %4850 = vmatprep.mubr.msk.bf16.mxu0 %vm673_vm0, %v5070_v37  ;;  %3247 = vperm.xlu0 %5044, %v3191_v39  }
  0x99   : > { %v5784_v11 = vpop.permute.xlu0 %1349  ;;  %v5787_v12 = vpop.permute.xlu1 %1361 }
  0x9a   : > { %3283 = vperm.xlu1 %5045, %v3194_v40   ;;  %v3998_v40 = vld [vmem:[%s6725_s6 + $0x20] sm:$0xf] }
  0x9b   : > { %3271 = vperm.xlu0 %5044, %v3193_v41   ;;  %v4280_v41 = vld [vmem:[%s6726_s7 + $0x10] sm:$0xff] }
  0x9d   : > { %v5798_v16 = vpop.permute.xlu0 %1373  ;;  %v5807_v19 = vpop.permute.xlu1 %1385 }
  0x9e   : > { %4851 = vmatmul.mubr.msk.bf16.gmra.mrb[32].mxu0 %vm673_vm0, %v5070_v37  ;;  %3307 = vperm.xlu1 %5045, %v3196_v43   ;;  %v4278_v37 = vld [vmem:[%s6726_s7] sm:$0xff]  ;;  %v4281_v43 = vld [vmem:[%s6726_s7 + $0x18] sm:$0xff] }
  0x9f   : > { %4852 = vmatprep.mubr.msk.bf16.mxu0 %vm673_vm0, %v5071_v42  ;;  %3295 = vperm.xlu0 %5044, %v3195_v44   ;;  %v3999_v44 = vld [vmem:[%s6725_s6 + $0x24] sm:$0xf] }
  0xa1   : > { %v5816_v22 = vpop.permute.xlu0 %1397  ;;  %v5821_v24 = vpop.permute.xlu1 %1409 }
  0xa2   : > { %3331 = vperm.xlu1 %5045, %v3198_v45  }
  0xa3   : > { %3319 = vperm.xlu0 %5044, %v3197_v46   ;;  %v5081_v46 = vld [vmem:[%s6720_s1 + $0x98] sm:$0xff]  }
  0xa5   : > { %v5831_v27 = vpop.permute.xlu0 %1421  ;;  %v5839_v30 = vpop.permute.xlu1 %1433 }
  0xa6   : > { %4853 = vmatmul.mubr.msk.bf16.gmra.mrb[36].mxu0 %vm673_vm0, %v5071_v42  ;;  %3355 = vperm.xlu1 %5045, %v3200_v48   ;;  %v4000_v48 = vld [vmem:[%s6725_s6 + $0x28] sm:$0xf] }
  0xa7   : > { %4854 = vmatprep.mubr.msk.bf16.mxu0 %vm673_vm0, %v5072_v47  ;;  %3343 = vperm.xlu0 %5044, %v3199_v49   ;;  %v4282_v49 = vld [vmem:[%s6726_s7 + $0x20] sm:$0xff] }
  0xa9   : > { %v5851_v34 = vpop.permute.xlu0 %1445  ;;  %v5854_v35 = vpop.permute.xlu1 %1457 }
  0xaa   : > { %3379 = vperm.xlu1 %5045, %v3202_v50  }
  0xab   : > { %3367 = vperm.xlu0 %5044, %v3201_v51   ;;  %v4283_v51 = vld [vmem:[%s6726_s7 + $0x28] sm:$0xff] }
  0xad   : > { %v5865_v39 = vpop.permute.xlu0 %1469  ;;  %v5874_v42 = vpop.permute.xlu1 %1481 }
  0xae   : > { %4855 = vmatmul.mubr.msk.bf16.gmra.mrb[40].mxu0 %vm673_vm0, %v5072_v47  ;;  %3403 = vperm.xlu1 %5045, %v3204_v53  }
  0xaf   : > { %4856 = vmatprep.mubr.msk.bf16.mxu0 %vm673_vm0, %v5073_v52  ;;  %3391 = vperm.xlu0 %5044, %v3203_v54   ;;  %v5082_v54 = vld [vmem:[%s6720_s1 + $0xa0] sm:$0xff]  }
  0xb1   : > { %v5883_v45 = vpop.permute.xlu0 %1493  ;;  %v5888_v47 = vpop.permute.xlu1 %1505 }
  0xb2   : > { %3427 = vperm.xlu1 %5045, %v3206_v55   ;;  %v4002_v55 = vld [vmem:[%s6725_s6 + $0x30] sm:$0xf] }
  0xb3   : > { %3415 = vperm.xlu0 %5044, %v3205_v56   ;;  %v4284_v56 = vld [vmem:[%s6726_s7 + $0x30] sm:$0xff] }
  0xb5   : > { %v5898_v50 = vpop.permute.xlu0 %1517  ;;  %v5906_v53 = vpop.permute.xlu1 %1529 }
  0xb6   : > { %4857 = vmatmul.mubr.msk.bf16.gmra.mrb[44].mxu0 %vm673_vm0, %v5073_v52  ;;  %3451 = vperm.xlu1 %5045, %v3208_v58   ;;  %v4001_v52 = vld [vmem:[%s6725_s6 + $0x2c] sm:$0xf] }
  0xb7   : > { %4858 = vmatprep.mubr.msk.bf16.mxu0 %vm673_vm0, %v5074_v57  ;;  %3439 = vperm.xlu0 %5044, %v3207_v59   ;;  %v4285_v59 = vld [vmem:[%s6726_s7 + $0x38] sm:$0xff] }
  0xb9   : > { %v5921_v58 = vpop.permute.xlu1 %1553 }
  0xba   : > { %3475 = vperm.xlu1 %5045, %v3210_v60   ;;  %v4003_v60 = vld [vmem:[%s6725_s6 + $0x34] sm:$0xf] }
  0xbb   : > { %3463 = vperm.xlu0 %5044, %v3209_v61   ;;  %v5083_v61 = vld [vmem:[%s6720_s1 + $0xa8] sm:$0xff]  }
  0xbe   : > { %4859 = vmatmul.mubr.msk.bf16.gmra.mrb[48].mxu0 %vm673_vm0, %v5074_v57  ;;  %3499 = vperm.xlu1 %5045, %v3212_v1   ;;  %v5918_v57 = vpop.permute.xlu0 %1541  ;;  %v4004_v1 = vld [vmem:[%s6725_s6 + $0x38] sm:$0xf] }
  0xbf   : > { %4860 = vmatprep.mubr.msk.bf16.mxu0 %vm673_vm0, %v5075_v63  ;;  %3487 = vperm.xlu0 %5044, %v3211_v2   ;;  %v4286_v2 = vld [vmem:[%s6726_s7 + $0x40] sm:$0xff] }
  0xc2   : > { %3523 = vperm.xlu1 %5045, %v3214_v5   ;;  %v5941_v5 = vpop.permute.xlu1 %1577 }
  0xc3   : > { %3511 = vperm.xlu0 %5044, %v3213_v6   ;;  %v4287_v6 = vld [vmem:[%s6726_s7 + $0x48] sm:$0xff] }
  0xc6   : > { %4861 = vmatmul.mubr.msk.bf16.gmra.mrb[52].mxu0 %vm673_vm0, %v5075_v63  ;;  %3547 = vperm.xlu1 %5045, %v3216_v9   ;;  %v5932_v63 = vpop.permute.xlu0 %1565 }
  0xc7   : > { %4862 = vmatprep.mubr.msk.bf16.mxu0 %vm673_vm0, %v5076_v8  ;;  %3535 = vperm.xlu0 %5044, %v3215_v10   ;;  %v5084_v10 = vld [vmem:[%s6720_s1 + $0xb0] sm:$0xff]  }
  0xca   : > { %3571 = vperm.xlu1 %5045, %v3218_v13   ;;  %v5950_v9 = vpop.permute.xlu0 %1589  ;;  %v5955_v13 = vpop.permute.xlu1 %1601 }
  0xcb   : > { %3559 = vperm.xlu0 %5044, %v3217_v14   ;;  %v4289_v14 = vld [vmem:[%s6726_s7 + $0x58] sm:$0xff] }
  0xce   : > { %4863 = vmatmul.mubr.msk.bf16.gmra.mrb[56].mxu0 %vm673_vm0, %v5076_v8  ;;  %3595 = vperm.xlu1 %5045, %v3220_v17   ;;  %v4005_v8 = vld [vmem:[%s6725_s6 + $0x3c] sm:$0xf]  ;;  %v5965_v17 = vpop.permute.xlu0 %1613 }
  0xcf   : > { %4864 = vmatprep.mubr.msk.bf16.mxu0 %vm673_vm0, %v5077_v15  ;;  %3583 = vperm.xlu0 %5044, %v3219_v18   ;;  %v4291_v18 = vld [vmem:[%s6726_s7 + $0x68] sm:$0xff] }
  0xd2   : > { %4020 = vperm.xlu1 %5045, %v3991_v20   ;;  %v4290_v20 = vld [vmem:[%s6726_s7 + $0x60] sm:$0xff] }
  0xd3   : > { %4008 = vperm.xlu0 %5044, %v3990_v21   ;;  %v5973_v21 = vpop.permute.xlu1 %1625 }
  0xd6   : > { %4865 = vmatmul.mubr.msk.bf16.gmra.mrb[60].mxu0 %vm673_vm0, %v5077_v15  ;;  %4044 = vperm.xlu1 %5045, %v3993_v25   ;;  %v4288_v15 = vld [vmem:[%s6726_s7 + $0x50] sm:$0xff]  ;;  %v4293_v25 = vld [vmem:[%s6726_s7 + $0x78] sm:$0xff] }
  0xd7   : > { %4866 = vmatprep.mubr.msk.bf16.mxu0 %vm673_vm0, %v5078_v23  ;;  %4032 = vperm.xlu0 %5044, %v3992_v26   ;;  %v4292_v26 = vld [vmem:[%s6726_s7 + $0x70] sm:$0xff] }
  0xda   : > { %4068 = vperm.xlu1 %5045, %v3995_v28   ;;  %v5985_v28 = vpop.permute.xlu0 %1637 }
  0xdb   : > { %4056 = vperm.xlu0 %5044, %v3994_v29   ;;  %v5988_v29 = vpop.permute.xlu1 %1649 }
  0xde   : > { %4867 = vmatmul.mubr.msk.bf16.gmra.mrb[64].mxu0 %vm673_vm0, %v5078_v23  ;;  %4092 = vperm.xlu1 %5045, %v3997_v32   ;;  %v5085_v23 = vld [vmem:[%s6720_s1 + $0xb8] sm:$0xff]   ;;  %v5086_v32 = vld [vmem:[%s6720_s1 + $0xc0] sm:$0xff]  }
  0xdf   : > { %4868 = vmatprep.mubr.msk.bf16.mxu0 %vm673_vm0, %v5079_v31  ;;  %4080 = vperm.xlu0 %5044, %v3996_v33   ;;  %v5993_v33 = vpop.permute.xlu0 %1661 }
  0xe2   : > { %4333 = vperm.xlu1 %5045, %v4279_v36   ;;  %v5087_v36 = vld [vmem:[%s6720_s1 + $0xc8] sm:$0xff]  }
  0xe3   : > { %4328 = vperm.xlu0 %5044, %v4278_v37   ;;  %v5279_v37 = vmov 839922192  }
  0xe6   : > { %4869 = vmatmul.mubr.msk.bf16.gmra.mrb[68].mxu0 %vm673_vm0, %v5079_v31  ;;  %4104 = vperm.xlu1 %5045, %v3998_v40   ;;  %v4480_v31 = vld [vmem:[#allocation2] sm:$0x1]  ;;  %v1307_v40 = vlaneseq }
  0xe7   : > { %4870 = vmatprep.mubr.msk.bf16.mxu0 %vm673_vm0, %v5080_v38  ;;  %4338 = vperm.xlu0 %5044, %v4280_v41   ;;  %v5088_v41 = vld [vmem:[%s6720_s1 + $0xd0] sm:$0xff]  }
  0xe8   : > { %vm4512_vm1 = vcmp.lt.s32.totalorder %v1307_v40, 256 }
  0xea   : > { %4343 = vperm.xlu1 %5045, %v4281_v43  }
  0xeb   : > { %4116 = vperm.xlu0 %5044, %v3999_v44   ;;  %v6006_v44 = vshrl.u32 %v1307_v40, 7 }
  0xee   : > { %4871 = vmatmul.mubr.msk.bf16.gmra.mrb[72].mxu0 %vm673_vm0, %v5080_v38  ;;  %4128 = vperm.xlu1 %5045, %v4000_v48   ;;  %v1305_v38 = vunpack.c.l.s4 %v5279_v37  ;;  %v5089_v48 = vld [vmem:[%s6720_s1 + $0xd8] sm:$0xff]  }
  0xef   : > { %4872 = vmatprep.mubr.msk.bf16.mxu0 %vm673_vm0, %v5081_v46  ;;  %4348 = vperm.xlu0 %5044, %v4282_v49  }
  0xf0   : > { %v1306_v43 = vunpack.c.0.s8 %v1305_v38 }
  0xf2   : > { %4353 = vperm.xlu1 %5045, %v4283_v51  }
  0xf3   : > { %4140 = vperm.xlu0 %5044, %v4001_v52  }
  0xf6   : > { %4873 = vmatmul.mubr.msk.bf16.gmra.mrb[76].mxu0 %vm673_vm0, %v5081_v46  ;;  %4152 = vperm.xlu1 %5045, %v4002_v55   ;;  %v6011_v46 = vsub.s32 %v1306_v43, %v6006_v44 }
  0xf7   : > { %4874 = vmatprep.mubr.msk.bf16.mxu0 %vm673_vm0, %v5082_v54  ;;  %4358 = vperm.xlu0 %5044, %v4284_v56  }
  0xf8   : > { %v1310_v49 = vrot.slane %v5749_v62, %v6011_v46  ;;  %v1322_v51 = vrot.slane %v5764_v4, %v6011_v46  ;;  %v5096_v62 = vld [vmem:[%s6722_s3 + $0x4] ss:$16 sps:$4 sm:$0xff]   ;;  %v1334_v4 = vrot.slane %v5754_v0, %v6011_v46  ;;  %v5091_v0 = vld [vmem:[%s6720_s1 + $0xe8] sm:$0xff]  }
  0xf9   : > { %2803 = vmatprep.mubr.bf16.mxu1 %v5096_v62 }
  0xfa   : > { %4363 = vperm.xlu1 %5045, %v4285_v59   ;;  %v5090_v59 = vld [vmem:[%s6720_s1 + $0xe0] sm:$0xff]  }
  0xfb   : > { %4164 = vperm.xlu0 %5044, %v4003_v60  }
  0xfe   : > { %4875 = vmatmul.mubr.msk.bf16.gmra.mrb[80].mxu0 %vm673_vm0, %v5082_v54  ;;  %4176 = vperm.xlu1 %5045, %v4004_v1   ;;  %v4676_v54 = vcombine.low %v1310_v49, %v1322_v51 }
  0xff   : > { %4876 = vmatprep.mubr.msk.bf16.mxu0 %vm673_vm0, %v5083_v61  ;;  %4368 = vperm.xlu0 %5044, %v4286_v2   ;;  %v1346_v2 = vrot.slane %v5772_v7, %v6011_v46 }
 0x102   : > { %4373 = vperm.xlu1 %5045, %v4287_v6  }
 0x103   : > { %4188 = vperm.xlu0 %5044, %v4005_v8  }
 0x106   : > { %4877 = vmatmul.mubr.msk.bf16.gmra.mrb[84].mxu0 %vm673_vm0, %v5083_v61  ;;  %4383 = vperm.xlu1 %5045, %v4289_v14  }
 0x107   : > { %4878 = vmatprep.mubr.msk.bf16.mxu0 %vm673_vm0, %v5084_v10  ;;  %4378 = vperm.xlu0 %5044, %v4288_v15   ;;  %v4677_v15 = vcombine.low %v1334_v4, %v1346_v2 }
 0x10a   : > { %4393 = vperm.xlu1 %5045, %v4291_v18  }
 0x10b   : > { %4388 = vperm.xlu0 %5044, %v4290_v20  }
 0x10e   : > { %4879 = vmatmul.mubr.msk.bf16.gmra.mrb[88].mxu0 %vm673_vm0, %v5084_v10  ;;  %4403 = vperm.xlu1 %5045, %v4293_v25  }
 0x10f   : > { %4880 = vmatprep.mubr.msk.bf16.mxu0 %vm673_vm0, %v5085_v23  ;;  %4398 = vperm.xlu0 %5044, %v4292_v26  }
 0x113   : > { %4483 = vperm.xlu0 %5044, %v4480_v31   ;;  %v1370_v31 = vrot.slane %v5787_v12, %v6011_v46  ;;  %v5092_v12 = vld [vmem:[%s6720_s1 + $0xf0] sm:$0xff]  }
 0x116   : > { %4881 = vmatmul.mubr.msk.bf16.gmra.mrb[92].mxu0 %vm673_vm0, %v5085_v23 }
 0x117   : > { %4882 = vmatprep.mubr.msk.bf16.mxu0 %vm673_vm0, %v5086_v32 }
 0x11e   : > { %4883 = vmatmul.mubr.msk.bf16.gmra.mrb[96].mxu0 %vm673_vm0, %v5086_v32  ;;  %v1358_v32 = vrot.slane %v5784_v11, %v6011_v46 }
 0x11f   : > { %4884 = vmatprep.mubr.msk.bf16.mxu0 %vm673_vm0, %v5087_v36 }
 0x120   : > { %v4678_v43 = vcombine.low %v1358_v32, %v1370_v31 }
 0x126   : > { %4885 = vmatmul.mubr.msk.bf16.gmra.mrb[100].mxu0 %vm673_vm0, %v5087_v36 }
 0x127   : > { %4886 = vmatprep.mubr.msk.bf16.mxu0 %vm673_vm0, %v5088_v41 }
 0x12e   : > { %4887 = vmatmul.mubr.msk.bf16.gmra.mrb[104].mxu0 %vm673_vm0, %v5088_v41 }
 0x12f   : > { %4888 = vmatprep.mubr.msk.bf16.mxu0 %vm673_vm0, %v5089_v48 }
 0x131   : > { %v852_v52 = vpop.f32.mrb[0].mxu0 }
 0x132   : > { %v854_v55 = vpop.f32.mrb[1].mxu0 }
 0x133   : > { %v856_v56 = vpop.f32.mrb[2].mxu0 }
 0x134   : > { %v1171_v60 = vpack.c.bf16 %v856_v56, %v852_v52  ;;  %v858_v61 = vpop.f32.mrb[3].mxu0  ;;  %v1382_v56 = vrot.slane %v5798_v16, %v6011_v46 }
 0x135   : > { %v1172_v1 = vpack.c.bf16 %v858_v61, %v854_v55  ;;  %v1394_v55 = vrot.slane %v5807_v19, %v6011_v46  ;;  %v5093_v19 = vld [vmem:[%s6720_s1 + $0xf8] sm:$0xff]  }
 0x136   : > { %v2259_v6 = vadd.bf16 %v4676_v54, %v1171_v60  ;;  %4889 = vmatmul.mubr.msk.bf16.gmra.mrb[108].mxu0 %vm673_vm0, %v5089_v48 }
 0x137   : > { %v2260_v8 = vadd.bf16 %v4676_v54, %v1172_v1  ;;  %4890 = vmatprep.mubr.msk.bf16.mxu0 %vm673_vm0, %v5090_v59  ;;  %v4679_v1 = vcombine.low %v1382_v56, %v1394_v55  ;;  %v1454_v55 = vrot.slane %v5851_v34, %v6011_v46  ;;  %v1478_v34 = vrot.slane %v5865_v39, %v6011_v46 }
 0x138   : > { %v2323_v20 = vmax.bf16 %v5278_v3, %v2259_v6  ;;  %v1514_v39 = vrot.slane %v5888_v47, %v6011_v46  ;;  %v1538_v47 = vrot.slane %v5906_v53, %v6011_v46  ;;  %v1562_v53 = vrot.slane %v5921_v58, %v6011_v46 }
 0x139   : > { %v862_v10 = vpop.f32.mrb[4].mxu0  ;;  %v2324_v14 = vmax.bf16 %v5278_v3, %v2260_v8  ;;  %v1586_v58 = vrot.slane %v5941_v5, %v6011_v46  ;;  %v1610_v5 = vrot.slane %v5955_v13, %v6011_v46  ;;  %v1634_v13 = vrot.slane %v5973_v21, %v6011_v46 }
 0x13a   : > { %v864_v18 = vpop.f32.mrb[5].mxu0  ;;  %v1658_v21 = vrot.slane %v5988_v29, %v6011_v46 }
 0x13b   : > { %v866_v23 = vpop.f32.mrb[6].mxu0  ;;  %2771 = vmatprep.subr.bf16.mxu1 %v2324_v14  ;;  %v1418_v14 = vrot.slane %v5821_v24, %v6011_v46 }
 0x13c   : > { %v1173_v7 = vpack.c.bf16 %v866_v23, %v862_v10  ;;  %v868_v25 = vpop.f32.mrb[7].mxu0  ;;  %2772 = vmatpush1.bf16.msra.mxu1 %v2323_v20 }
 0x13d   : > { %v1174_v26 = vpack.c.bf16 %v868_v25, %v864_v18 }
 0x13e   : > { %v2261_v36 = vadd.bf16 %v4677_v15, %v1173_v7  ;;  %4891 = vmatmul.mubr.msk.bf16.gmra.mrb[112].mxu0 %vm673_vm0, %v5090_v59 }
 0x13f   : > { %v2262_v37 = vadd.bf16 %v4677_v15, %v1174_v26  ;;  %4892 = vmatprep.mubr.msk.bf16.mxu0 %vm673_vm0, %v5091_v0  ;;  %v1406_v15 = vrot.slane %v5816_v22, %v6011_v46  ;;  %v1442_v22 = vrot.slane %v5839_v30, %v6011_v46 }
 0x140   : > { %v2325_v49 = vmax.bf16 %v5278_v3, %v2261_v36 }
 0x141   : > { %v872_v38 = vpop.f32.mrb[8].mxu0  ;;  %v2326_v41 = vmax.bf16 %v5278_v3, %v2262_v37  ;;  %v4680_v7 = vcombine.low %v1406_v15, %v1418_v14  ;;  %v1430_v37 = vrot.slane %v5831_v27, %v6011_v46  ;;  %v1466_v27 = vrot.slane %v5854_v35, %v6011_v46 }
 0x142   : > { %v874_v48 = vpop.f32.mrb[9].mxu0  ;;  %v1490_v35 = vrot.slane %v5874_v42, %v6011_v46 }
 0x143   : > { %v876_v51 = vpop.f32.mrb[10].mxu0  ;;  %2773 = vmatprep.subr.bf16.mxu1 %v2326_v41 }
 0x144   : > { %v1175_v11 = vpack.c.bf16 %v876_v51, %v872_v38  ;;  %v878_v52 = vpop.f32.mrb[11].mxu0  ;;  %2774 = vmatpush1.bf16.msra.mxu1 %v2325_v49  ;;  %v4681_v49 = vcombine.low %v1430_v37, %v1442_v22 }
 0x145   : > { %v1176_v54 = vpack.c.bf16 %v878_v52, %v874_v48 }
 0x146   : > { %v2263_v59 = vadd.bf16 %v4678_v43, %v1175_v11  ;;  %4893 = vmatmul.mubr.msk.bf16.gmra.mrb[116].mxu0 %vm673_vm0, %v5091_v0 }
 0x147   : > { %v2264_v60 = vadd.bf16 %v4678_v43, %v1176_v54  ;;  %4894 = vmatprep.mubr.msk.bf16.mxu0 %vm673_vm0, %v5092_v12 }
 0x148   : > { %v2327_v2 = vmax.bf16 %v5278_v3, %v2263_v59 }
 0x149   : > { %v882_v61 = vpop.f32.mrb[12].mxu0  ;;  %v2328_v62 = vmax.bf16 %v5278_v3, %v2264_v60 }
 0x14a   : > { %v884_v4 = vpop.f32.mrb[13].mxu0 }
 0x14b   : > { %v886_v6 = vpop.f32.mrb[14].mxu0  ;;  %2775 = vmatprep.subr.bf16.mxu1 %v2328_v62  ;;  %v4682_v62 = vcombine.low %v1454_v55, %v1466_v27 }
 0x14c   : > { %v1177_v16 = vpack.c.bf16 %v886_v6, %v882_v61  ;;  %v888_v8 = vpop.f32.mrb[15].mxu0  ;;  %2776 = vmatpush1.bf16.msra.mxu1 %v2327_v2 }
 0x14d   : > { %v1178_v10 = vpack.c.bf16 %v888_v8, %v884_v4 }
 0x14e   : > { %v2265_v18 = vadd.bf16 %v4679_v1, %v1177_v16  ;;  %4895 = vmatmul.mubr.msk.bf16.gmra.mrb[120].mxu0 %vm673_vm0, %v5092_v12 }
 0x14f   : > { %v2266_v20 = vadd.bf16 %v4679_v1, %v1178_v10  ;;  %4896 = vmatprep.mubr.msk.bf16.mxu0 %vm673_vm0, %v5093_v19 }
 0x150   : > { %v2329_v26 = vmax.bf16 %v5278_v3, %v2265_v18  ;;  %v4683_v18 = vcombine.low %v1478_v34, %v1490_v35 }
 0x151   : > { %v892_v23 = vpop.f32.mrb[16].mxu0  ;;  %v2330_v0 = vmax.bf16 %v5278_v3, %v2266_v20 }
 0x152   : > { %v894_v25 = vpop.f32.mrb[17].mxu0 }
 0x153   : > { %v896_v31 = vpop.f32.mrb[18].mxu0  ;;  %2777 = vmatprep.subr.bf16.mxu1 %v2330_v0 }
 0x154   : > { %v1179_v32 = vpack.c.bf16 %v896_v31, %v892_v23  ;;  %v898_v24 = vpop.f32.mrb[19].mxu0  ;;  %2778 = vmatpush1.bf16.msra.mxu1 %v2329_v26 }
 0x155   : > { %v1180_v36 = vpack.c.bf16 %v898_v24, %v894_v25 }
 0x156   : > { %v2267_v38 = vadd.bf16 %v4680_v7, %v1179_v32  ;;  %4897 = vmatmul.mubr.msk.bf16.gmra.mrb[124].mxu0 %vm673_vm0, %v5093_v19  ;;  %v1502_v32 = vrot.slane %v5883_v45, %v6011_v46  ;;  %v1526_v45 = vrot.slane %v5898_v50, %v6011_v46  ;;  %v1550_v50 = vrot.slane %v5918_v57, %v6011_v46 }
 0x157   : > { %v2268_v41 = vadd.bf16 %v4680_v7, %v1180_v36  ;;  %v1574_v57 = vrot.slane %v5932_v63, %v6011_v46  ;;  %v1598_v63 = vrot.slane %v5950_v9, %v6011_v46  ;;  %v1622_v9 = vrot.slane %v5965_v17, %v6011_v46 }
 0x158   : > { %v2331_v12 = vmax.bf16 %v5278_v3, %v2267_v38  ;;  %v4685_v55 = vcombine.low %v1526_v45, %v1538_v47  ;;  %v1646_v17 = vrot.slane %v5985_v28, %v6011_v46  ;;  %v1670_v28 = vrot.slane %v5993_v33, %v6011_v46 }
 0x159   : > { %v902_v43 = vpop.f32.mrb[20].mxu0  ;;  %v2332_v48 = vmax.bf16 %v5278_v3, %v2268_v41  ;;  %v4684_v41 = vcombine.low %v1502_v32, %v1514_v39 }
 0x15a   : > { %v904_v51 = vpop.f32.mrb[21].mxu0 }
 0x15b   : > { %v906_v11 = vpop.f32.mrb[22].mxu0  ;;  %2779 = vmatprep.subr.bf16.mxu1 %v2332_v48 }
 0x15c   : > { %v1181_v52 = vpack.c.bf16 %v906_v11, %v902_v43  ;;  %v908_v54 = vpop.f32.mrb[23].mxu0  ;;  %2780 = vmatpush1.bf16.msra.mxu1 %v2331_v12 }
 0x15d   : > { %v1182_v30 = vpack.c.bf16 %v908_v54, %v904_v51 }
 0x15e   : > { %v2269_v56 = vadd.bf16 %v4681_v49, %v1181_v52 }
 0x15f   : > { %v2270_v59 = vadd.bf16 %v4681_v49, %v1182_v30 }
 0x160   : > { %v2333_v4 = vmax.bf16 %v5278_v3, %v2269_v56 }
 0x161   : > { %v912_v60 = vpop.f32.mrb[24].mxu0  ;;  %v2334_v61 = vmax.bf16 %v5278_v3, %v2270_v59 }
 0x162   : > { %v914_v1 = vpop.f32.mrb[25].mxu0 }
 0x163   : > { %v916_v2 = vpop.f32.mrb[26].mxu0  ;;  %2781 = vmatprep.subr.bf16.mxu1 %v2334_v61 }
 0x164   : > { %v1183_v6 = vpack.c.bf16 %v916_v2, %v912_v60  ;;  %v918_v19 = vpop.f32.mrb[27].mxu0  ;;  %2782 = vmatpush1.bf16.msra.mxu1 %v2333_v4 }
 0x165   : > { %v1184_v16 = vpack.c.bf16 %v918_v19, %v914_v1 }
 0x166   : > { %v2271_v8 = vadd.bf16 %v4682_v62, %v1183_v6 }
 0x167   : > { %v2272_v10 = vadd.bf16 %v4682_v62, %v1184_v16  ;;  %v4686_v16 = vcombine.low %v1550_v50, %v1562_v53 }
 0x168   : > { %v2335_v23 = vmax.bf16 %v5278_v3, %v2271_v8 }
 0x169   : > { %v922_v14 = vpop.f32.mrb[28].mxu0  ;;  %v2336_v15 = vmax.bf16 %v5278_v3, %v2272_v10 }
 0x16a   : > { %v924_v20 = vpop.f32.mrb[29].mxu0 }
 0x16b   : > { %v926_v0 = vpop.f32.mrb[30].mxu0  ;;  %2783 = vmatprep.subr.bf16.mxu1 %v2336_v15 }
 0x16c   : > { %v1185_v7 = vpack.c.bf16 %v926_v0, %v922_v14  ;;  %v928_v25 = vpop.f32.mrb[31].mxu0  ;;  %2784 = vmatpush1.bf16.msra.mxu1 %v2335_v23 }
 0x16d   : > { %v1186_v26 = vpack.c.bf16 %v928_v25, %v924_v20 }
 0x16e   : > { %v2273_v31 = vadd.bf16 %v4683_v18, %v1185_v7  ;;  %v4687_v7 = vcombine.low %v1574_v57, %v1586_v58 }
 0x16f   : > { %v2274_v42 = vadd.bf16 %v4683_v18, %v1186_v26 }
 0x170   : > { %v2337_v37 = vmax.bf16 %v5278_v3, %v2273_v31 }
 0x171   : > { %v932_v24 = vpop.f32.mrb[32].mxu0  ;;  %v2338_v36 = vmax.bf16 %v5278_v3, %v2274_v42 }
 0x172   : > { %v934_v22 = vpop.f32.mrb[33].mxu0 }
 0x173   : > { %v936_v38 = vpop.f32.mrb[34].mxu0  ;;  %2785 = vmatprep.subr.bf16.mxu1 %v2338_v36 }
 0x174   : > { %v1187_v43 = vpack.c.bf16 %v936_v38, %v932_v24  ;;  %v938_v48 = vpop.f32.mrb[35].mxu0  ;;  %2786 = vmatpush1.bf16.msra.mxu1 %v2337_v37  ;;  %v4688_v38 = vcombine.low %v1598_v63, %v1610_v5 }
 0x175   : > { %v1188_v49 = vpack.c.bf16 %v938_v48, %v934_v22 }
 0x176   : > { %v2275_v51 = vadd.bf16 %v4684_v41, %v1187_v43 }
 0x177   : > { %v2276_v12 = vadd.bf16 %v4684_v41, %v1188_v49 }
 0x178   : > { %v2339_v30 = vmax.bf16 %v5278_v3, %v2275_v51 }
 0x179   : > { %v942_v11 = vpop.f32.mrb[36].mxu0  ;;  %v2340_v52 = vmax.bf16 %v5278_v3, %v2276_v12 }
 0x17a   : > { %v944_v54 = vpop.f32.mrb[37].mxu0 }
 0x17b   : > { %v946_v27 = vpop.f32.mrb[38].mxu0  ;;  %2787 = vmatprep.subr.bf16.mxu1 %v2340_v52 }
 0x17c   : > { %v1189_v56 = vpack.c.bf16 %v946_v27, %v942_v11  ;;  %v948_v59 = vpop.f32.mrb[39].mxu0  ;;  %2788 = vmatpush1.bf16.msra.mxu1 %v2339_v30 }
 0x17d   : > { %v1190_v60 = vpack.c.bf16 %v948_v59, %v944_v54  ;;  %v4689_v54 = vcombine.low %v1622_v9, %v1634_v13 }
 0x17e   : > { %v2277_v61 = vadd.bf16 %v4685_v55, %v1189_v56 }
 0x17f   : > { %v2278_v62 = vadd.bf16 %v4685_v55, %v1190_v60 }
 0x180   : > { %v2341_v6 = vmax.bf16 %v5278_v3, %v2277_v61 }
 0x181   : > { %v952_v1 = vpop.f32.mrb[40].mxu0  ;;  %v2342_v4 = vmax.bf16 %v5278_v3, %v2278_v62 }
 0x182   : > { %v954_v2 = vpop.f32.mrb[41].mxu0 }
 0x183   : > { %v956_v19 = vpop.f32.mrb[42].mxu0  ;;  %2789 = vmatprep.subr.bf16.mxu1 %v2342_v4 }
 0x184   : > { %v1191_v35 = vpack.c.bf16 %v956_v19, %v952_v1  ;;  %v958_v34 = vpop.f32.mrb[43].mxu0  ;;  %2790 = vmatpush1.bf16.msra.mxu1 %v2341_v6  ;;  %v4690_v1 = vcombine.low %v1646_v17, %v1658_v21 }
 0x185   : > { %v1192_v8 = vpack.c.bf16 %v958_v34, %v954_v2 }
 0x186   : > { %v2279_v10 = vadd.bf16 %v4686_v16, %v1191_v35 }
 0x187   : > { %v2280_v14 = vadd.bf16 %v4686_v16, %v1192_v8  ;;  %v1674_v16 = vpop.permute.xlu1 %1673 }
 0x188   : > { %v2343_v23 = vmax.bf16 %v5278_v3, %v2279_v10  ;;  %v1682_v29 = vrot.slane %v1674_v16, %v6011_v46 }
 0x189   : > { %v962_v15 = vpop.f32.mrb[44].mxu0  ;;  %v2344_v18 = vmax.bf16 %v5278_v3, %v2280_v14 }
 0x18a   : > { %v964_v20 = vpop.f32.mrb[45].mxu0  ;;  %v4691_v57 = vcombine.low %v1670_v28, %v1682_v29  ;;  %v5103_v29 = vld [vmem:[%s6722_s3 + $0x64] ss:$16 sps:$4 sm:$0xff]  }
 0x18b   : > { %v966_v0 = vpop.f32.mrb[46].mxu0  ;;  %2791 = vmatprep.subr.bf16.mxu1 %v2344_v18 }
 0x18c   : > { %v1193_v25 = vpack.c.bf16 %v966_v0, %v962_v15  ;;  %v968_v26 = vpop.f32.mrb[47].mxu0  ;;  %2792 = vmatpush1.bf16.msra.mxu1 %v2343_v23  ;;  %v1698_v0 = vpop.permute.xlu1 %1697 }
 0x18d   : > { %v1194_v31 = vpack.c.bf16 %v968_v26, %v964_v20  ;;  %v1706_v26 = vrot.slane %v1698_v0, %v6011_v46 }
 0x18e   : > { %v2281_v42 = vadd.bf16 %v4687_v7, %v1193_v25 }
 0x18f   : > { %v2282_v39 = vadd.bf16 %v4687_v7, %v1194_v31  ;;  %v1686_v7 = vpop.permute.xlu0 %1685 }
 0x190   : > { %v2345_v22 = vmax.bf16 %v5278_v3, %v2281_v42  ;;  %v1694_v33 = vrot.slane %v1686_v7, %v6011_v46  ;;  %v5105_v7 = vld [vmem:[%s6722_s3 + $0x60] ss:$16 sps:$4 sm:$0xff]  }
 0x191   : > { %v972_v32 = vpop.f32.mrb[48].mxu0  ;;  %v2346_v24 = vmax.bf16 %v5278_v3, %v2282_v39 }
 0x192   : > { %v974_v36 = vpop.f32.mrb[49].mxu0 }
 0x193   : > { %v976_v37 = vpop.f32.mrb[50].mxu0  ;;  %2793 = vmatprep.subr.bf16.mxu1 %v2346_v24  ;;  %v4692_v24 = vcombine.low %v1694_v33, %v1706_v26 }
 0x194   : > { %v1195_v41 = vpack.c.bf16 %v976_v37, %v972_v32  ;;  %v978_v43 = vpop.f32.mrb[51].mxu0  ;;  %2794 = vmatpush1.bf16.msra.mxu1 %v2345_v22  ;;  %v5094_v32 = vld [vmem:[%s6722_s3] ss:$16 sps:$4 sm:$0xff]   ;;  %v5097_v37 = vld [vmem:[%s6722_s3 + $0x24] ss:$16 sps:$4 sm:$0xff]  }
 0x195   : > { %v1196_v48 = vpack.c.bf16 %v978_v43, %v974_v36  ;;  %v1722_v43 = vpop.permute.xlu1 %1721 }
 0x196   : > { %v2283_v49 = vadd.bf16 %v4688_v38, %v1195_v41 }
 0x197   : > { %v2284_v51 = vadd.bf16 %v4688_v38, %v1196_v48  ;;  %v1710_v48 = vpop.permute.xlu0 %1709 }
 0x198   : > { %v2347_v11 = vmax.bf16 %v5278_v3, %v2283_v49  ;;  %v1718_v13 = vrot.slane %v1710_v48, %v6011_v46  ;;  %v5108_v48 = vld [vmem:[%s6722_s3 + $0x80] ss:$16 sps:$4 sm:$0xff]  }
 0x199   : > { %v982_v12 = vpop.f32.mrb[52].mxu0  ;;  %v2348_v47 = vmax.bf16 %v5278_v3, %v2284_v51  ;;  %v1730_v51 = vrot.slane %v1722_v43, %v6011_v46  ;;  %v1746_v21 = vpop.permute.xlu1 %1745 }
 0x19a   : > { %v984_v45 = vpop.f32.mrb[53].mxu0 }
 0x19b   : > { %v986_v52 = vpop.f32.mrb[54].mxu0  ;;  %2795 = vmatprep.subr.bf16.mxu1 %v2348_v47  ;;  %v1734_v17 = vpop.permute.xlu0 %1733 }
 0x19c   : > { %v1197_v30 = vpack.c.bf16 %v986_v52, %v982_v12  ;;  %v988_v27 = vpop.f32.mrb[55].mxu0  ;;  %2796 = vmatpush1.bf16.msra.mxu1 %v2347_v11  ;;  %v5099_v52 = vld [vmem:[%s6722_s3 + $0x20] ss:$16 sps:$4 sm:$0xff]  }
 0x19d   : > { %v1198_v55 = vpack.c.bf16 %v988_v27, %v984_v45 }
 0x19e   : > { %v2285_v56 = vadd.bf16 %v4689_v54, %v1197_v30 }
 0x19f   : > { %v2286_v59 = vadd.bf16 %v4689_v54, %v1198_v55  ;;  %v4693_v54 = vcombine.low %v1718_v13, %v1730_v51  ;;  %v5100_v55 = vld [vmem:[%s6722_s3 + $0x44] ss:$16 sps:$4 sm:$0xff]  }
 0x1a0   : > { %v2349_v53 = vmax.bf16 %v5278_v3, %v2285_v56 }
 0x1a1   : > { %v992_v60 = vpop.f32.mrb[56].mxu0  ;;  %v2350_v61 = vmax.bf16 %v5278_v3, %v2286_v59 }
 0x1a2   : > { %v994_v62 = vpop.f32.mrb[57].mxu0 }
 0x1a3   : > { %v996_v50 = vpop.f32.mrb[58].mxu0  ;;  %2797 = vmatprep.subr.bf16.mxu1 %v2350_v61  ;;  %v1754_v61 = vrot.slane %v1746_v21, %v6011_v46 }
 0x1a4   : > { %v1199_v4 = vpack.c.bf16 %v996_v50, %v992_v60  ;;  %v998_v2 = vpop.f32.mrb[59].mxu0  ;;  %2798 = vmatpush1.bf16.msra.mxu1 %v2349_v53 }
 0x1a5   : > { %v1200_v6 = vpack.c.bf16 %v998_v2, %v994_v62  ;;  %v1742_v62 = vrot.slane %v1734_v17, %v6011_v46  ;;  %v5111_v17 = vld [vmem:[%s6722_s3 + $0xa0] ss:$16 sps:$4 sm:$0xff]  }
 0x1a6   : > { %v2287_v19 = vadd.bf16 %v4690_v1, %v1199_v4 }
 0x1a7   : > { %v2288_v35 = vadd.bf16 %v4690_v1, %v1200_v6  ;;  %v5102_v6 = vld [vmem:[%s6722_s3 + $0x40] ss:$16 sps:$4 sm:$0xff]  }
 0x1a8   : > { %v2351_v14 = vmax.bf16 %v5278_v3, %v2287_v19  ;;  %v4694_v19 = vcombine.low %v1742_v62, %v1754_v61 }
 0x1a9   : > { %v1002_v34 = vpop.f32.mrb[60].mxu0  ;;  %v2352_v8 = vmax.bf16 %v5278_v3, %v2288_v35 }
 0x1aa   : > { %v1004_v10 = vpop.f32.mrb[61].mxu0 }
 0x1ab   : > { %v1006_v58 = vpop.f32.mrb[62].mxu0  ;;  %2799 = vmatprep.subr.bf16.mxu1 %v2352_v8  ;;  %v1770_v8 = vpop.permute.xlu1 %1769 }
 0x1ac   : > { %v1201_v15 = vpack.c.bf16 %v1006_v58, %v1002_v34  ;;  %v1008_v18 = vpop.f32.mrb[63].mxu0  ;;  %2800 = vmatpush1.bf16.msra.mxu1 %v2351_v14  ;;  %v1778_v58 = vrot.slane %v1770_v8, %v6011_v46 }
 0x1ad   : > { %v1202_v20 = vpack.c.bf16 %v1008_v18, %v1004_v10  ;;  %v1758_v10 = vpop.permute.xlu0 %1757 }
 0x1ae   : > { %v2289_v23 = vadd.bf16 %v4691_v57, %v1201_v15 }
 0x1af   : > { %v2290_v25 = vadd.bf16 %v4691_v57, %v1202_v20  ;;  %v1766_v57 = vrot.slane %v1758_v10, %v6011_v46  ;;  %v5114_v10 = vld [vmem:[%s6722_s3 + $0xc0] ss:$16 sps:$4 sm:$0xff]  }
 0x1b0   : > { %v2353_v5 = vmax.bf16 %v5278_v3, %v2289_v23 }
 0x1b1   : > { %v1012_v31 = vpop.f32.mrb[64].mxu0  ;;  %v2354_v42 = vmax.bf16 %v5278_v3, %v2290_v25  ;;  %v4695_v25 = vcombine.low %v1766_v57, %v1778_v58 }
 0x1b2   : > { %v1014_v39 = vpop.f32.mrb[65].mxu0 }
 0x1b3   : > { %v1016_v63 = vpop.f32.mrb[66].mxu0  ;;  %2801 = vmatprep.subr.bf16.mxu1 %v2354_v42 }
 0x1b4   : > { %v1203_v36 = vpack.c.bf16 %v1016_v63, %v1012_v31  ;;  %v1018_v22 = vpop.f32.mrb[67].mxu0  ;;  %2802 = vmatpush1.bf16.msra.mxu1 %v2353_v5  ;;  %v5106_v31 = vld [vmem:[%s6722_s3 + $0x84] ss:$16 sps:$4 sm:$0xff]   ;;  %v1794_v5 = vpop.permute.xlu1 %1793 }
 0x1b5   : > { %v1204_v38 = vpack.c.bf16 %v1018_v22, %v1014_v39  ;;  %v1782_v63 = vpop.permute.xlu0 %1781 }
 0x1b6   : > { %v2291_v41 = vadd.bf16 %v4692_v24, %v1203_v36  ;;  %v1790_v36 = vrot.slane %v1782_v63, %v6011_v46  ;;  %v5117_v63 = vld [vmem:[%s6722_s3 + $0xe0] ss:$16 sps:$4 sm:$0xff]  }
 0x1b7   : > { %v2292_v49 = vadd.bf16 %v4692_v24, %v1204_v38  ;;  %2804 = vmatmul.mubr.bf16.vlgmr.msra.gmra.mrb[0].mxu1 %v5094_v32  ;;  %v1802_v24 = vrot.slane %v1794_v5, %v6011_v46 }
 0x1b8   : > { %2813 = vmatprep.mubr.bf16.mxu1 %v5097_v37  ;;  %v2355_v47 = vmax.bf16 %v5278_v3, %v2291_v41 }
 0x1b9   : > { %v1022_v9 = vpop.f32.mrb[68].mxu0  ;;  %v2356_v12 = vmax.bf16 %v5278_v3, %v2292_v49  ;;  %v4696_v49 = vcombine.low %v1790_v36, %v1802_v24 }
 0x1ba   : > { %v1024_v45 = vpop.f32.mrb[69].mxu0 }
 0x1bb   : > { %v1026_v11 = vpop.f32.mrb[70].mxu0  ;;  %2964 = vmatprep.subr.bf16.mxu1 %v2356_v12 }
 0x1bc   : > { %v1205_v30 = vpack.c.bf16 %v1026_v11, %v1022_v9  ;;  %v1028_v27 = vpop.f32.mrb[71].mxu0  ;;  %2965 = vmatpush1.bf16.msra.mxu1 %v2355_v47  ;;  %v5109_v9 = vld [vmem:[%s6722_s3 + $0xa4] ss:$16 sps:$4 sm:$0xff]   ;;  %v1806_v11 = vpop.permute.xlu0 %1805 }
 0x1bd   : > { %v1206_v56 = vpack.c.bf16 %v1028_v27, %v1024_v45  ;;  %v1818_v45 = vpop.permute.xlu1 %1817 }
 0x1be   : > { %v2293_v59 = vadd.bf16 %v4693_v54, %v1205_v30  ;;  %v1814_v30 = vrot.slane %v1806_v11, %v6011_v46  ;;  %v5120_v11 = vld [vmem:[%s6722_s3 + $0x100] ss:$16 sps:$4 sm:$0xff]  }
 0x1bf   : > { %v2294_v60 = vadd.bf16 %v4693_v54, %v1206_v56  ;;  %2814 = vmatmul.mubr.bf16.gmra.mrb[4].mxu1 %v5099_v52  ;;  %v1826_v54 = vrot.slane %v1818_v45, %v6011_v46 }
 0x1c0   : > { %2823 = vmatprep.mubr.bf16.mxu1 %v5100_v55  ;;  %v2357_v1 = vmax.bf16 %v5278_v3, %v2293_v59 }
 0x1c1   : > { %v1032_v53 = vpop.f32.mrb[72].mxu0  ;;  %v2358_v50 = vmax.bf16 %v5278_v3, %v2294_v60  ;;  %v4697_v60 = vcombine.low %v1814_v30, %v1826_v54 }
 0x1c2   : > { %v1034_v4 = vpop.f32.mrb[73].mxu0 }
 0x1c3   : > { %v1036_v2 = vpop.f32.mrb[74].mxu0  ;;  %2966 = vmatprep.subr.bf16.mxu1 %v2358_v50 }
 0x1c4   : > { %v1207_v16 = vpack.c.bf16 %v1036_v2, %v1032_v53  ;;  %v1038_v35 = vpop.f32.mrb[75].mxu0  ;;  %2967 = vmatpush1.bf16.msra.mxu1 %v2357_v1  ;;  %v5112_v53 = vld [vmem:[%s6722_s3 + $0xc4] ss:$16 sps:$4 sm:$0xff]   ;;  %v1830_v2 = vpop.permute.xlu0 %1829 }
 0x1c5   : > { %v1208_v28 = vpack.c.bf16 %v1038_v35, %v1034_v4  ;;  %v1842_v4 = vpop.permute.xlu1 %1841 }
 0x1c6   : > { %v2295_v34 = vadd.bf16 %v4694_v19, %v1207_v16  ;;  %v1838_v16 = vrot.slane %v1830_v2, %v6011_v46  ;;  %v5123_v2 = vld [vmem:[%s6722_s3 + $0x120] ss:$16 sps:$4 sm:$0xff]  }
 0x1c7   : > { %v2296_v14 = vadd.bf16 %v4694_v19, %v1208_v28  ;;  %2824 = vmatmul.mubr.bf16.gmra.mrb[8].mxu1 %v5102_v6  ;;  %v1850_v19 = vrot.slane %v1842_v4, %v6011_v46 }
 0x1c8   : > { %2833 = vmatprep.mubr.bf16.mxu1 %v5103_v29  ;;  %v2359_v20 = vmax.bf16 %v5278_v3, %v2295_v34 }
 0x1c9   : > { %v1042_v15 = vpop.f32.mrb[76].mxu0  ;;  %v2360_v18 = vmax.bf16 %v5278_v3, %v2296_v14  ;;  %v4698_v14 = vcombine.low %v1838_v16, %v1850_v19 }
 0x1ca   : > { %v1044_v23 = vpop.f32.mrb[77].mxu0 }
 0x1cb   : > { %v1046_v0 = vpop.f32.mrb[78].mxu0  ;;  %2968 = vmatprep.subr.bf16.mxu1 %v2360_v18 }
 0x1cc   : > { %v1209_v26 = vpack.c.bf16 %v1046_v0, %v1042_v15  ;;  %v1048_v33 = vpop.f32.mrb[79].mxu0  ;;  %2969 = vmatpush1.bf16.msra.mxu1 %v2359_v20  ;;  %v5115_v15 = vld [vmem:[%s6722_s3 + $0xe4] ss:$16 sps:$4 sm:$0xff]   ;;  %v1854_v0 = vpop.permute.xlu0 %1853 }
 0x1cd   : > { %v1210_v42 = vpack.c.bf16 %v1048_v33, %v1044_v23  ;;  %v1866_v23 = vpop.permute.xlu1 %1865 }
 0x1ce   : > { %v2297_v39 = vadd.bf16 %v4695_v25, %v1209_v26  ;;  %v1862_v26 = vrot.slane %v1854_v0, %v6011_v46  ;;  %v5126_v0 = vld [vmem:[%s6722_s3 + $0x140] ss:$16 sps:$4 sm:$0xff]  }
 0x1cf   : > { %v2298_v32 = vadd.bf16 %v4695_v25, %v1210_v42  ;;  %2834 = vmatmul.mubr.bf16.gmra.mrb[12].mxu1 %v5105_v7  ;;  %v1874_v25 = vrot.slane %v1866_v23, %v6011_v46 }
 0x1d0   : > { %2843 = vmatprep.mubr.bf16.mxu1 %v5106_v31  ;;  %v2361_v38 = vmax.bf16 %v5278_v3, %v2297_v39 }
 0x1d1   : > { %v1052_v22 = vpop.f32.mrb[80].mxu0  ;;  %v2362_v37 = vmax.bf16 %v5278_v3, %v2298_v32  ;;  %v4699_v32 = vcombine.low %v1862_v26, %v1874_v25 }
 0x1d2   : > { %v1054_v41 = vpop.f32.mrb[81].mxu0 }
 0x1d3   : > { %v1056_v43 = vpop.f32.mrb[82].mxu0  ;;  %2970 = vmatprep.subr.bf16.mxu1 %v2362_v37 }
 0x1d4   : > { %v1211_v51 = vpack.c.bf16 %v1056_v43, %v1052_v22  ;;  %v1058_v13 = vpop.f32.mrb[83].mxu0  ;;  %2971 = vmatpush1.bf16.msra.mxu1 %v2361_v38  ;;  %v5118_v22 = vld [vmem:[%s6722_s3 + $0x104] ss:$16 sps:$4 sm:$0xff]   ;;  %v1878_v43 = vpop.permute.xlu0 %1877 }
 0x1d5   : > { %v1212_v12 = vpack.c.bf16 %v1058_v13, %v1054_v41  ;;  %v1890_v41 = vpop.permute.xlu1 %1889 }
 0x1d6   : > { %v2299_v47 = vadd.bf16 %v4696_v49, %v1211_v51  ;;  %v1886_v51 = vrot.slane %v1878_v43, %v6011_v46  ;;  %v5129_v43 = vld [vmem:[%s6722_s3 + $0x160] ss:$16 sps:$4 sm:$0xff]  }
 0x1d7   : > { %v2300_v52 = vadd.bf16 %v4696_v49, %v1212_v12  ;;  %2844 = vmatmul.mubr.bf16.gmra.mrb[16].mxu1 %v5108_v48  ;;  %v1898_v49 = vrot.slane %v1890_v41, %v6011_v46 }
 0x1d8   : > { %2853 = vmatprep.mubr.bf16.mxu1 %v5109_v9  ;;  %v2363_v56 = vmax.bf16 %v5278_v3, %v2299_v47 }
 0x1d9   : > { %v1062_v27 = vpop.f32.mrb[84].mxu0  ;;  %v2364_v55 = vmax.bf16 %v5278_v3, %v2300_v52  ;;  %v4700_v52 = vcombine.low %v1886_v51, %v1898_v49 }
 0x1da   : > { %v1064_v59 = vpop.f32.mrb[85].mxu0 }
 0x1db   : > { %v1066_v21 = vpop.f32.mrb[86].mxu0  ;;  %2972 = vmatprep.subr.bf16.mxu1 %v2364_v55 }
 0x1dc   : > { %v1213_v61 = vpack.c.bf16 %v1066_v21, %v1062_v27  ;;  %v1068_v62 = vpop.f32.mrb[87].mxu0  ;;  %2973 = vmatpush1.bf16.msra.mxu1 %v2363_v56  ;;  %v5121_v27 = vld [vmem:[%s6722_s3 + $0x124] ss:$16 sps:$4 sm:$0xff]   ;;  %v1902_v21 = vpop.permute.xlu0 %1901 }
 0x1dd   : > { %v1214_v50 = vpack.c.bf16 %v1068_v62, %v1064_v59  ;;  %v1914_v59 = vpop.permute.xlu1 %1913 }
 0x1de   : > { %v2301_v1 = vadd.bf16 %v4697_v60, %v1213_v61  ;;  %v1910_v61 = vrot.slane %v1902_v21, %v6011_v46  ;;  %v5132_v21 = vld [vmem:[%s6722_s3 + $0x180] ss:$16 sps:$4 sm:$0xff]  }
 0x1df   : > { %v2302_v6 = vadd.bf16 %v4697_v60, %v1214_v50  ;;  %2854 = vmatmul.mubr.bf16.gmra.mrb[20].mxu1 %v5111_v17  ;;  %v1922_v60 = vrot.slane %v1914_v59, %v6011_v46 }
 0x1e0   : > { %2863 = vmatprep.mubr.bf16.mxu1 %v5112_v53  ;;  %v2365_v28 = vmax.bf16 %v5278_v3, %v2301_v1 }
 0x1e1   : > { %v1072_v35 = vpop.f32.mrb[88].mxu0  ;;  %v2366_v29 = vmax.bf16 %v5278_v3, %v2302_v6  ;;  %v4701_v6 = vcombine.low %v1910_v61, %v1922_v60 }
 0x1e2   : > { %v1074_v34 = vpop.f32.mrb[89].mxu0 }
 0x1e3   : > { %v1076_v8 = vpop.f32.mrb[90].mxu0  ;;  %2974 = vmatprep.subr.bf16.mxu1 %v2366_v29 }
 0x1e4   : > { %v1215_v58 = vpack.c.bf16 %v1076_v8, %v1072_v35  ;;  %v1078_v57 = vpop.f32.mrb[91].mxu0  ;;  %2975 = vmatpush1.bf16.msra.mxu1 %v2365_v28  ;;  %v5124_v35 = vld [vmem:[%s6722_s3 + $0x144] ss:$16 sps:$4 sm:$0xff]   ;;  %v1926_v8 = vpop.permute.xlu0 %1925 }
 0x1e5   : > { %v1216_v18 = vpack.c.bf16 %v1078_v57, %v1074_v34  ;;  %v1938_v34 = vpop.permute.xlu1 %1937 }
 0x1e6   : > { %v2303_v20 = vadd.bf16 %v4698_v14, %v1215_v58  ;;  %v1934_v58 = vrot.slane %v1926_v8, %v6011_v46  ;;  %v5135_v8 = vld [vmem:[%s6722_s3 + $0x1a0] ss:$16 sps:$4 sm:$0xff]  }
 0x1e7   : > { %v2304_v7 = vadd.bf16 %v4698_v14, %v1216_v18  ;;  %2864 = vmatmul.mubr.bf16.gmra.mrb[24].mxu1 %v5114_v10  ;;  %v1946_v14 = vrot.slane %v1938_v34, %v6011_v46 }
 0x1e8   : > { %2873 = vmatprep.mubr.bf16.mxu1 %v5115_v15  ;;  %v2367_v42 = vmax.bf16 %v5278_v3, %v2303_v20 }
 0x1e9   : > { %v1082_v33 = vpop.f32.mrb[92].mxu0  ;;  %v2368_v31 = vmax.bf16 %v5278_v3, %v2304_v7  ;;  %v4702_v7 = vcombine.low %v1934_v58, %v1946_v14 }
 0x1ea   : > { %v1084_v39 = vpop.f32.mrb[93].mxu0 }
 0x1eb   : > { %v1086_v5 = vpop.f32.mrb[94].mxu0  ;;  %2976 = vmatprep.subr.bf16.mxu1 %v2368_v31 }
 0x1ec   : > { %v1217_v24 = vpack.c.bf16 %v1086_v5, %v1082_v33  ;;  %v1088_v36 = vpop.f32.mrb[95].mxu0  ;;  %2977 = vmatpush1.bf16.msra.mxu1 %v2367_v42  ;;  %v5127_v33 = vld [vmem:[%s6722_s3 + $0x164] ss:$16 sps:$4 sm:$0xff]   ;;  %v1950_v5 = vpop.permute.xlu0 %1949 }
 0x1ed   : > { %v1218_v37 = vpack.c.bf16 %v1088_v36, %v1084_v39  ;;  %v1962_v39 = vpop.permute.xlu1 %1961 }
 0x1ee   : > { %v2305_v38 = vadd.bf16 %v4699_v32, %v1217_v24  ;;  %v1958_v24 = vrot.slane %v1950_v5, %v6011_v46  ;;  %v5138_v5 = vld [vmem:[%s6722_s3 + $0x1c0] ss:$16 sps:$4 sm:$0xff]  }
 0x1ef   : > { %v2306_v48 = vadd.bf16 %v4699_v32, %v1218_v37  ;;  %2874 = vmatmul.mubr.bf16.gmra.mrb[28].mxu1 %v5117_v63  ;;  %v1970_v32 = vrot.slane %v1962_v39, %v6011_v46 }
 0x1f0   : > { %2883 = vmatprep.mubr.bf16.mxu1 %v5118_v22  ;;  %v2369_v12 = vmax.bf16 %v5278_v3, %v2305_v38 }
 0x1f1   : > { %v1092_v13 = vpop.f32.mrb[96].mxu0  ;;  %v2370_v9 = vmax.bf16 %v5278_v3, %v2306_v48  ;;  %v4703_v48 = vcombine.low %v1958_v24, %v1970_v32 }
 0x1f2   : > { %v1094_v47 = vpop.f32.mrb[97].mxu0 }
 0x1f3   : > { %v1096_v45 = vpop.f32.mrb[98].mxu0  ;;  %2978 = vmatprep.subr.bf16.mxu1 %v2370_v9 }
 0x1f4   : > { %v1219_v54 = vpack.c.bf16 %v1096_v45, %v1092_v13  ;;  %v1098_v30 = vpop.f32.mrb[99].mxu0  ;;  %2979 = vmatpush1.bf16.msra.mxu1 %v2369_v12  ;;  %v5130_v13 = vld [vmem:[%s6722_s3 + $0x184] ss:$16 sps:$4 sm:$0xff]   ;;  %v1974_v45 = vpop.permute.xlu0 %1973 }
 0x1f5   : > { %v1220_v55 = vpack.c.bf16 %v1098_v30, %v1094_v47  ;;  %v1986_v47 = vpop.permute.xlu1 %1985 }
 0x1f6   : > { %v2307_v56 = vadd.bf16 %v4700_v52, %v1219_v54  ;;  %v1982_v54 = vrot.slane %v1974_v45, %v6011_v46  ;;  %v5141_v45 = vld [vmem:[%s6722_s3 + $0x1e0] ss:$16 sps:$4 sm:$0xff]  }
 0x1f7   : > { %v2308_v17 = vadd.bf16 %v4700_v52, %v1220_v55  ;;  %2884 = vmatmul.mubr.bf16.gmra.mrb[32].mxu1 %v5120_v11  ;;  %v1994_v52 = vrot.slane %v1986_v47, %v6011_v46 }
 0x1f8   : > { %2893 = vmatprep.mubr.bf16.mxu1 %v5121_v27  ;;  %v2371_v50 = vmax.bf16 %v5278_v3, %v2307_v56 }
 0x1f9   : > { %v1102_v62 = vpop.f32.mrb[100].mxu0  ;;  %v2372_v53 = vmax.bf16 %v5278_v3, %v2308_v17  ;;  %v4704_v17 = vcombine.low %v1982_v54, %v1994_v52 }
 0x1fa   : > { %v1104_v1 = vpop.f32.mrb[101].mxu0 }
 0x1fb   : > { %v1106_v4 = vpop.f32.mrb[102].mxu0  ;;  %2980 = vmatprep.subr.bf16.mxu1 %v2372_v53 }
 0x1fc   : > { %v1221_v19 = vpack.c.bf16 %v1106_v4, %v1102_v62  ;;  %v1108_v16 = vpop.f32.mrb[103].mxu0  ;;  %2981 = vmatpush1.bf16.msra.mxu1 %v2371_v50  ;;  %v5133_v62 = vld [vmem:[%s6722_s3 + $0x1a4] ss:$16 sps:$4 sm:$0xff]   ;;  %v1998_v4 = vpop.permute.xlu0 %1997 }
 0x1fd   : > { %v1222_v29 = vpack.c.bf16 %v1108_v16, %v1104_v1  ;;  %v2010_v1 = vpop.permute.xlu1 %2009 }
 0x1fe   : > { %v2309_v28 = vadd.bf16 %v4701_v6, %v1221_v19  ;;  %v2006_v19 = vrot.slane %v1998_v4, %v6011_v46  ;;  %v5154_v4 = vld [vmem:[%s6722_s3 + $0x8c] ss:$16 sps:$4 sm:$0xff]  }
 0x1ff   : > { %v2310_v10 = vadd.bf16 %v4701_v6, %v1222_v29  ;;  %2894 = vmatmul.mubr.bf16.gmra.mrb[36].mxu1 %v5123_v2  ;;  %v2018_v6 = vrot.slane %v2010_v1, %v6011_v46  ;;  %v5153_v1 = vld [vmem:[%s6722_s3 + $0x68] ss:$16 sps:$4 sm:$0xff]  }
 0x200   : > { %2903 = vmatprep.mubr.bf16.mxu1 %v5124_v35  ;;  %v2373_v18 = vmax.bf16 %v5278_v3, %v2309_v28 }
 0x201   : > { %v1112_v57 = vpop.f32.mrb[104].mxu0  ;;  %v2374_v15 = vmax.bf16 %v5278_v3, %v2310_v10  ;;  %v4705_v10 = vcombine.low %v2006_v19, %v2018_v6  ;;  %v5157_v6 = vld [vmem:[%s6722_s3 + $0xac] ss:$16 sps:$4 sm:$0xff]   ;;  %v5159_v19 = vld [vmem:[%s6722_s3 + $0xa8] ss:$16 sps:$4 sm:$0xff]  }
 0x202   : > { %v1114_v20 = vpop.f32.mrb[105].mxu0 }
 0x203   : > { %v1116_v23 = vpop.f32.mrb[106].mxu0  ;;  %2982 = vmatprep.subr.bf16.mxu1 %v2374_v15 }
 0x204   : > { %v1223_v25 = vpack.c.bf16 %v1116_v23, %v1112_v57  ;;  %v1118_v26 = vpop.f32.mrb[107].mxu0  ;;  %2983 = vmatpush1.bf16.msra.mxu1 %v2373_v18  ;;  %v5136_v57 = vld [vmem:[%s6722_s3 + $0x1c4] ss:$16 sps:$4 sm:$0xff]   ;;  %v2022_v23 = vpop.permute.xlu0 %2021 }
 0x205   : > { %v1224_v31 = vpack.c.bf16 %v1118_v26, %v1114_v20  ;;  %v2034_v20 = vpop.permute.xlu1 %2033 }
 0x206   : > { %v2311_v42 = vadd.bf16 %v4702_v7, %v1223_v25  ;;  %v2030_v25 = vrot.slane %v2022_v23, %v6011_v46  ;;  %v5180_v23 = vld [vmem:[%s6722_s3 + $0x188] ss:$16 sps:$4 sm:$0xff]  }
 0x207   : > { %v2312_v63 = vadd.bf16 %v4702_v7, %v1224_v31  ;;  %2904 = vmatmul.mubr.bf16.gmra.mrb[40].mxu1 %v5126_v0  ;;  %v2042_v7 = vrot.slane %v2034_v20, %v6011_v46  ;;  %v5178_v20 = vld [vmem:[%s6722_s3 + $0x18c] ss:$16 sps:$4 sm:$0xff]  }
 0x208   : > { %2913 = vmatprep.mubr.bf16.mxu1 %v5127_v33  ;;  %v2375_v37 = vmax.bf16 %v5278_v3, %v2311_v42 }
 0x209   : > { %v1122_v36 = vpop.f32.mrb[108].mxu0  ;;  %v2376_v22 = vmax.bf16 %v5278_v3, %v2312_v63  ;;  %v4706_v63 = vcombine.low %v2030_v25, %v2042_v7  ;;  %v5183_v7 = vld [vmem:[%s6722_s3 + $0x1a8] ss:$16 sps:$4 sm:$0xff]   ;;  %v5184_v25 = vld [vmem:[%s6722_s3 + $0x1cc] ss:$16 sps:$4 sm:$0xff]  }
 0x20a   : > { %v1124_v38 = vpop.f32.mrb[109].mxu0 }
 0x20b   : > { %v1126_v41 = vpop.f32.mrb[110].mxu0  ;;  %2984 = vmatprep.subr.bf16.mxu1 %v2376_v22 }
 0x20c   : > { %v1225_v49 = vpack.c.bf16 %v1126_v41, %v1122_v36  ;;  %v1128_v51 = vpop.f32.mrb[111].mxu0  ;;  %2985 = vmatpush1.bf16.msra.mxu1 %v2375_v37  ;;  %v5139_v36 = vld [vmem:[%s6722_s3 + $0x1e4] ss:$16 sps:$4 sm:$0xff]   ;;  %v2046_v41 = vpop.permute.xlu0 %2045 }
 0x20d   : > { %v1226_v9 = vpack.c.bf16 %v1128_v51, %v1124_v38  ;;  %v2058_v38 = vpop.permute.xlu1 %2057 }
 0x20e   : > { %v2313_v12 = vadd.bf16 %v4703_v48, %v1225_v49  ;;  %v2054_v49 = vrot.slane %v2046_v41, %v6011_v46  ;;  %v5192_v41 = vld [vmem:[%s6724_s5 + $0x4] ss:$8 sps:$4 sm:$0xff]  }
 0x20f   : > { %v2314_v11 = vadd.bf16 %v4703_v48, %v1226_v9  ;;  %2914 = vmatmul.mubr.bf16.gmra.mrb[44].mxu1 %v5129_v43  ;;  %v2066_v48 = vrot.slane %v2058_v38, %v6011_v46  ;;  %3893 = vmatprep.mubr.bf16.mxu0 %v5192_v41 }
 0x210   : > { %2923 = vmatprep.mubr.bf16.mxu1 %v5130_v13  ;;  %v2377_v55 = vmax.bf16 %v5278_v3, %v2313_v12 }
 0x211   : > { %v1132_v30 = vpop.f32.mrb[112].mxu0  ;;  %v2378_v27 = vmax.bf16 %v5278_v3, %v2314_v11  ;;  %v4707_v11 = vcombine.low %v2054_v49, %v2066_v48  ;;  %v5195_v48 = vld [vmem:[%s6724_s5 + $0x44] ss:$8 sps:$4 sm:$0xff]  }
 0x212   : > { %v1134_v56 = vpop.f32.mrb[113].mxu0 }
 0x213   : > { %v1136_v59 = vpop.f32.mrb[114].mxu0  ;;  %2986 = vmatprep.subr.bf16.mxu1 %v2378_v27 }
 0x214   : > { %v1227_v60 = vpack.c.bf16 %v1136_v59, %v1132_v30  ;;  %v1138_v61 = vpop.f32.mrb[115].mxu0  ;;  %2987 = vmatpush1.bf16.msra.mxu1 %v2377_v55  ;;  %v5144_v30 = vld [vmem:[%s6722_s3 + $0xc] ss:$16 sps:$4 sm:$0xff]  }
 0x215   : > { %v1228_v53 = vpack.c.bf16 %v1138_v61, %v1134_v56  ;;  %v5147_v61 = vld [vmem:[%s6722_s3 + $0x28] ss:$16 sps:$4 sm:$0xff]  }
 0x216   : > { %v2315_v50 = vadd.bf16 %v4704_v17, %v1227_v60  ;;  %v5145_v60 = vld [vmem:[%s6722_s3 + $0x2c] ss:$16 sps:$4 sm:$0xff]  }
 0x217   : > { %v2316_v2 = vadd.bf16 %v4704_v17, %v1228_v53  ;;  %2924 = vmatmul.mubr.bf16.gmra.mrb[48].mxu1 %v5132_v21  ;;  %v5142_v17 = vld [vmem:[%s6722_s3 + $0x8] ss:$16 sps:$4 sm:$0xff]  }
 0x218   : > { %2933 = vmatprep.mubr.bf16.mxu1 %v5133_v62  ;;  %v2379_v29 = vmax.bf16 %v5278_v3, %v2315_v50  ;;  %v5148_v62 = vld [vmem:[%s6722_s3 + $0x4c] ss:$16 sps:$4 sm:$0xff]   ;;  %v5150_v53 = vld [vmem:[%s6722_s3 + $0x48] ss:$16 sps:$4 sm:$0xff]  }
 0x219   : > { %v1142_v16 = vpop.f32.mrb[116].mxu0  ;;  %v2380_v35 = vmax.bf16 %v5278_v3, %v2316_v2  ;;  %v5151_v50 = vld [vmem:[%s6722_s3 + $0x6c] ss:$16 sps:$4 sm:$0xff]   ;;  %v5156_v2 = vld [vmem:[%s6722_s3 + $0x88] ss:$16 sps:$4 sm:$0xff]  }
 0x21a   : > { %v1144_v28 = vpop.f32.mrb[117].mxu0 }
 0x21b   : > { %v1146_v34 = vpop.f32.mrb[118].mxu0  ;;  %2988 = vmatprep.subr.bf16.mxu1 %v2380_v35  ;;  %v5162_v35 = vld [vmem:[%s6722_s3 + $0xc8] ss:$16 sps:$4 sm:$0xff]  }
 0x21c   : > { %v1229_v14 = vpack.c.bf16 %v1146_v34, %v1142_v16  ;;  %v1148_v58 = vpop.f32.mrb[119].mxu0  ;;  %2989 = vmatpush1.bf16.msra.mxu1 %v2379_v29  ;;  %v5160_v16 = vld [vmem:[%s6722_s3 + $0xcc] ss:$16 sps:$4 sm:$0xff]  }
 0x21d   : > { %v1230_v15 = vpack.c.bf16 %v1148_v58, %v1144_v28  ;;  %v5163_v29 = vld [vmem:[%s6722_s3 + $0xec] ss:$16 sps:$4 sm:$0xff]   ;;  %v5165_v28 = vld [vmem:[%s6722_s3 + $0xe8] ss:$16 sps:$4 sm:$0xff]  }
 0x21e   : > { %v2317_v18 = vadd.bf16 %v4705_v10, %v1229_v14  ;;  %v5166_v34 = vld [vmem:[%s6722_s3 + $0x10c] ss:$16 sps:$4 sm:$0xff]   ;;  %v5171_v14 = vld [vmem:[%s6722_s3 + $0x128] ss:$16 sps:$4 sm:$0xff]  }
 0x21f   : > { %v2318_v0 = vadd.bf16 %v4705_v10, %v1230_v15  ;;  %2934 = vmatmul.mubr.bf16.gmra.mrb[52].mxu1 %v5135_v8  ;;  %v5168_v8 = vld [vmem:[%s6722_s3 + $0x108] ss:$16 sps:$4 sm:$0xff]   ;;  %v5169_v10 = vld [vmem:[%s6722_s3 + $0x12c] ss:$16 sps:$4 sm:$0xff]  }
 0x220   : > { %2943 = vmatprep.mubr.bf16.mxu1 %v5136_v57  ;;  %v2381_v31 = vmax.bf16 %v5278_v3, %v2317_v18  ;;  %v5172_v58 = vld [vmem:[%s6722_s3 + $0x14c] ss:$16 sps:$4 sm:$0xff]   ;;  %v5174_v57 = vld [vmem:[%s6722_s3 + $0x148] ss:$16 sps:$4 sm:$0xff]  }
 0x221   : > { %v1152_v26 = vpop.f32.mrb[120].mxu0  ;;  %v2382_v33 = vmax.bf16 %v5278_v3, %v2318_v0  ;;  %v5175_v15 = vld [vmem:[%s6722_s3 + $0x16c] ss:$16 sps:$4 sm:$0xff]   ;;  %v5177_v18 = vld [vmem:[%s6722_s3 + $0x168] ss:$16 sps:$4 sm:$0xff]  }
 0x222   : > { %v1154_v42 = vpop.f32.mrb[121].mxu0  ;;  %v5181_v0 = vld [vmem:[%s6722_s3 + $0x1ac] ss:$16 sps:$4 sm:$0xff]  }
 0x223   : > { %v1156_v39 = vpop.f32.mrb[122].mxu0  ;;  %2990 = vmatprep.subr.bf16.mxu1 %v2382_v33  ;;  %v5187_v33 = vld [vmem:[%s6722_s3 + $0x1ec] ss:$16 sps:$4 sm:$0xff]  }
 0x224   : > { %v1231_v32 = vpack.c.bf16 %v1156_v39, %v1152_v26  ;;  %v1158_v24 = vpop.f32.mrb[123].mxu0  ;;  %2991 = vmatpush1.bf16.msra.mxu1 %v2381_v31  ;;  %v5186_v26 = vld [vmem:[%s6722_s3 + $0x1c8] ss:$16 sps:$4 sm:$0xff]   ;;  %v3224_v39 = vpop.permute.xlu0 %3223 }
 0x225   : > { %v1232_v22 = vpack.c.bf16 %v1158_v24, %v1154_v42  ;;  %v5189_v31 = vld [vmem:[%s6722_s3 + $0x1e8] ss:$16 sps:$4 sm:$0xff]   ;;  %v3236_v42 = vpop.permute.xlu1 %3235 }
 0x226   : > { %v2319_v37 = vadd.bf16 %v4706_v63, %v1231_v32 }
 0x227   : > { %v2320_v43 = vadd.bf16 %v4706_v63, %v1232_v22  ;;  %2944 = vmatmul.mubr.bf16.gmra.mrb[56].mxu1 %v5138_v5  ;;  %v3244_v5 = vrot.slane %v3236_v42, %v6011_v46  ;;  %v3232_v63 = vrot.slane %v3224_v39, %v6011_v46 }
 0x228   : > { %2953 = vmatprep.mubr.bf16.mxu1 %v5139_v36  ;;  %v2383_v9 = vmax.bf16 %v5278_v3, %v2319_v37 }
 0x229   : > { %v1162_v51 = vpop.f32.mrb[124].mxu0  ;;  %v2384_v13 = vmax.bf16 %v5278_v3, %v2320_v43  ;;  %v4772_v22 = vcombine.low %v3232_v63, %v3244_v5 }
 0x22a   : > { %v1164_v12 = vpop.f32.mrb[125].mxu0 }
 0x22b   : > { %v1166_v47 = vpop.f32.mrb[126].mxu0  ;;  %2992 = vmatprep.subr.bf16.mxu1 %v2384_v13  ;;  %v3248_v13 = vpop.permute.xlu0 %3247 }
 0x22c   : > { %v1233_v52 = vpack.c.bf16 %v1166_v47, %v1162_v51  ;;  %v1168_v54 = vpop.f32.mrb[127].mxu0  ;;  %2993 = vmatpush1.bf16.msra.mxu1 %v2383_v9  ;;  %v3260_v51 = vpop.permute.xlu1 %3259  ;;  %v3256_v47 = vrot.slane %v3248_v13, %v6011_v46 }
 0x22d   : > { %v1234_v27 = vpack.c.bf16 %v1168_v54, %v1164_v12  ;;  %v3268_v12 = vrot.slane %v3260_v51, %v6011_v46 }
 0x22e   : > { %v2321_v55 = vadd.bf16 %v4707_v11, %v1233_v52 }
 0x22f   : > { %v2322_v56 = vadd.bf16 %v4707_v11, %v1234_v27  ;;  %2954 = vmatmul.mubr.bf16.gmra.mrb[60].mxu1 %v5141_v45  ;;  %v4773_v27 = vcombine.low %v3256_v47, %v3268_v12 }
 0x230   : > { %2996 = vmatprep.mubr.bf16.mxu1 %v5144_v30  ;;  %v2385_v21 = vmax.bf16 %v5278_v3, %v2321_v55 }
 0x231   : > { %v2386_v59 = vmax.bf16 %v5278_v3, %v2322_v56 }
 0x233   : > { %2994 = vmatprep.subr.bf16.mxu1 %v2386_v59 }
 0x234   : > { %2995 = vmatpush1.bf16.msra.mxu1 %v2385_v21 }
 0x237   : > { %2997 = vmatmul.mubr.bf16.vlgmr.msra.gmra.mrb[0].mxu1 %v5142_v17  ;;  %v3284_v17 = vpop.permute.xlu1 %3283 }
 0x238   : > { %3006 = vmatprep.mubr.bf16.mxu1 %v5145_v60  ;;  %v3272_v60 = vpop.permute.xlu0 %3271 }
 0x23f   : > { %3007 = vmatmul.mubr.bf16.gmra.mrb[4].mxu1 %v5147_v61 }
 0x240   : > { %3016 = vmatprep.mubr.bf16.mxu1 %v5148_v62  ;;  %v3292_v62 = vrot.slane %v3284_v17, %v6011_v46 }
 0x247   : > { %3017 = vmatmul.mubr.bf16.gmra.mrb[8].mxu1 %v5150_v53  ;;  %v3280_v53 = vrot.slane %v3272_v60, %v6011_v46 }
 0x248   : > { %3026 = vmatprep.mubr.bf16.mxu1 %v5151_v50 }
 0x24f   : > { %3027 = vmatmul.mubr.bf16.gmra.mrb[12].mxu1 %v5153_v1 }
 0x250   : > { %3036 = vmatprep.mubr.bf16.mxu1 %v5154_v4 }
 0x257   : > { %3037 = vmatmul.mubr.bf16.gmra.mrb[16].mxu1 %v5156_v2 }
 0x258   : > { %3046 = vmatprep.mubr.bf16.mxu1 %v5157_v6 }
 0x25f   : > { %3047 = vmatmul.mubr.bf16.gmra.mrb[20].mxu1 %v5159_v19  ;;  %v4774_v19 = vcombine.low %v3280_v53, %v3292_v62 }
 0x260   : > { %3056 = vmatprep.mubr.bf16.mxu1 %v5160_v16 }
 0x267   : > { %3057 = vmatmul.mubr.bf16.gmra.mrb[24].mxu1 %v5162_v35 }
 0x268   : > { %3066 = vmatprep.mubr.bf16.mxu1 %v5163_v29 }
 0x26f   : > { %3067 = vmatmul.mubr.bf16.gmra.mrb[28].mxu1 %v5165_v28 }
 0x270   : > { %3076 = vmatprep.mubr.bf16.mxu1 %v5166_v34  ;;  %v3308_v34 = vpop.permute.xlu1 %3307 }
 0x277   : > { %3077 = vmatmul.mubr.bf16.gmra.mrb[32].mxu1 %v5168_v8  ;;  %v3296_v8 = vpop.permute.xlu0 %3295 }
 0x278   : > { %3086 = vmatprep.mubr.bf16.mxu1 %v5169_v10 }
 0x27b   : > { %v3320_v42 = vpop.permute.xlu0 %3319 }
 0x27c   : > { %v3328_v63 = vrot.slane %v3320_v42, %v6011_v46 }
 0x27f   : > { %3087 = vmatmul.mubr.bf16.gmra.mrb[36].mxu1 %v5171_v14  ;;  %v3316_v14 = vrot.slane %v3308_v34, %v6011_v46  ;;  %v3344_v13 = vpop.permute.xlu0 %3343 }
 0x280   : > { %3096 = vmatprep.mubr.bf16.mxu1 %v5172_v58  ;;  %v3304_v58 = vrot.slane %v3296_v8, %v6011_v46  ;;  %v3352_v47 = vrot.slane %v3344_v13, %v6011_v46 }
 0x283   : > { %v3368_v60 = vpop.permute.xlu0 %3367 }
 0x284   : > { %v3376_v53 = vrot.slane %v3368_v60, %v6011_v46 }
 0x287   : > { %3097 = vmatmul.mubr.bf16.gmra.mrb[40].mxu1 %v5174_v57  ;;  %v3392_v8 = vpop.permute.xlu0 %3391 }
 0x288   : > { %3106 = vmatprep.mubr.bf16.mxu1 %v5175_v15 }
 0x28b   : > { %v3416_v42 = vpop.permute.xlu0 %3415 }
 0x28f   : > { %3107 = vmatmul.mubr.bf16.gmra.mrb[44].mxu1 %v5177_v18  ;;  %v3440_v13 = vpop.permute.xlu0 %3439 }
 0x290   : > { %3116 = vmatprep.mubr.bf16.mxu1 %v5178_v20 }
 0x293   : > { %v3464_v60 = vpop.permute.xlu0 %3463 }
 0x297   : > { %3117 = vmatmul.mubr.bf16.gmra.mrb[48].mxu1 %v5180_v23 }
 0x298   : > { %3126 = vmatprep.mubr.bf16.mxu1 %v5181_v0  ;;  %v4775_v0 = vcombine.low %v3304_v58, %v3316_v14  ;;  %v3400_v58 = vrot.slane %v3392_v8, %v6011_v46  ;;  %v3488_v8 = vpop.permute.xlu0 %3487 }
 0x29f   : > { %3127 = vmatmul.mubr.bf16.gmra.mrb[52].mxu1 %v5183_v7 }
 0x2a0   : > { %3136 = vmatprep.mubr.bf16.mxu1 %v5184_v25 }
 0x2a7   : > { %3137 = vmatmul.mubr.bf16.gmra.mrb[56].mxu1 %v5186_v26 }
 0x2a8   : > { %3146 = vmatprep.mubr.bf16.mxu1 %v5187_v33 }
 0x2af   : > { %3147 = vmatmul.mubr.bf16.gmra.mrb[60].mxu1 %v5189_v31  ;;  %v3332_v31 = vpop.permute.xlu1 %3331 }
 0x2b0   : > { %3933 = vmatprep.mubr.bf16.mxu1 %v5195_v48  ;;  %v3340_v5 = vrot.slane %v3332_v31, %v6011_v46 }
 0x2b3   : > { %v3356_v51 = vpop.permute.xlu1 %3355 }
 0x2b4   : > { %v3364_v12 = vrot.slane %v3356_v51, %v6011_v46 }
 0x2b7   : > { %v3380_v17 = vpop.permute.xlu1 %3379 }
 0x2b8   : > { %v3388_v62 = vrot.slane %v3380_v17, %v6011_v46 }
 0x2bb   : > { %v3404_v34 = vpop.permute.xlu1 %3403 }
 0x2bc   : > { %v3412_v14 = vrot.slane %v3404_v34, %v6011_v46 }
 0x2bf   : > { %v3428_v31 = vpop.permute.xlu1 %3427 }
 0x2c3   : > { %v3452_v51 = vpop.permute.xlu1 %3451 }
 0x2c7   : > { %v3476_v17 = vpop.permute.xlu1 %3475 }
 0x2cb   : > { %v3500_v34 = vpop.permute.xlu1 %3499 }
 0x30a   : > { %v2998_v32 = vpop.f32.mrb[0].mxu1 }
 0x30b   : > { %v3000_v24 = vpop.f32.mrb[1].mxu1 }
 0x30c   : > { %v3002_v36 = vpop.f32.mrb[2].mxu1 }
 0x30d   : > { %v3157_v37 = vpack.c.bf16 %v3002_v36, %v2998_v32  ;;  %v3004_v38 = vpop.f32.mrb[3].mxu1 }
 0x30e   : > { %v3158_v43 = vpack.c.bf16 %v3004_v38, %v3000_v24  ;;  %v4776_v38 = vcombine.low %v3328_v63, %v3340_v5  ;;  %v3436_v5 = vrot.slane %v3428_v31, %v6011_v46  ;;  %v3424_v63 = vrot.slane %v3416_v42, %v6011_v46  ;;  %v3524_v31 = vpop.permute.xlu1 %3523  ;;  %v3512_v42 = vpop.permute.xlu0 %3511 }
 0x30f   : > { %v3701_v49 = vadd.bf16 %v4772_v22, %v3157_v37 }
 0x310   : > { %v3702_v9 = vadd.bf16 %v4772_v22, %v3158_v43 }
 0x311   : > { %v3733_v52 = vmax.bf16 %v5278_v3, %v3701_v49 }
 0x312   : > { %v3008_v45 = vpop.f32.mrb[4].mxu1  ;;  %v3734_v11 = vmax.bf16 %v5278_v3, %v3702_v9 }
 0x313   : > { %v3010_v54 = vpop.f32.mrb[5].mxu1 }
 0x314   : > { %v3012_v30 = vpop.f32.mrb[6].mxu1  ;;  %3861 = vmatprep.subr.bf16.mxu0 %v3734_v11  ;;  %4898 = vmatprep.subr.bf16.mxu1 %v3734_v11 }
 0x315   : > { %v3159_v55 = vpack.c.bf16 %v3012_v30, %v3008_v45  ;;  %v3014_v56 = vpop.f32.mrb[7].mxu1  ;;  %3862 = vmatpush1.bf16.msra.mxu0 %v3733_v52  ;;  %4914 = vmatpush1.bf16.msra.mxu1 %v3733_v52 }
 0x316   : > { %v3160_v59 = vpack.c.bf16 %v3014_v56, %v3010_v54 }
 0x317   : > { %v3703_v21 = vadd.bf16 %v4773_v27, %v3159_v55 }
 0x318   : > { %v3704_v61 = vadd.bf16 %v4773_v27, %v3160_v59  ;;  %v4777_v27 = vcombine.low %v3352_v47, %v3364_v12  ;;  %v3460_v12 = vrot.slane %v3452_v51, %v6011_v46  ;;  %v3448_v47 = vrot.slane %v3440_v13, %v6011_v46  ;;  %v3548_v51 = vpop.permute.xlu1 %3547  ;;  %v3536_v13 = vpop.permute.xlu0 %3535 }
 0x319   : > { %v3735_v4 = vmax.bf16 %v5278_v3, %v3703_v21 }
 0x31a   : > { %v3018_v50 = vpop.f32.mrb[8].mxu1  ;;  %v3736_v1 = vmax.bf16 %v5278_v3, %v3704_v61 }
 0x31b   : > { %v3020_v2 = vpop.f32.mrb[9].mxu1 }
 0x31c   : > { %v3022_v6 = vpop.f32.mrb[10].mxu1  ;;  %3863 = vmatprep.subr.bf16.mxu0 %v3736_v1  ;;  %4899 = vmatprep.subr.bf16.mxu1 %v3736_v1 }
 0x31d   : > { %v3161_v16 = vpack.c.bf16 %v3022_v6, %v3018_v50  ;;  %v3024_v35 = vpop.f32.mrb[11].mxu1  ;;  %3864 = vmatpush1.bf16.msra.mxu0 %v3735_v4  ;;  %4915 = vmatpush1.bf16.msra.mxu1 %v3735_v4 }
 0x31e   : > { %v3162_v29 = vpack.c.bf16 %v3024_v35, %v3020_v2 }
 0x31f   : > { %v3705_v28 = vadd.bf16 %v4774_v19, %v3161_v16 }
 0x320   : > { %v3706_v10 = vadd.bf16 %v4774_v19, %v3162_v29  ;;  %v4778_v19 = vcombine.low %v3376_v53, %v3388_v62  ;;  %v3484_v62 = vrot.slane %v3476_v17, %v6011_v46  ;;  %v3472_v53 = vrot.slane %v3464_v60, %v6011_v46  ;;  %v3572_v17 = vpop.permute.xlu1 %3571  ;;  %v3560_v60 = vpop.permute.xlu0 %3559 }
 0x321   : > { %v3737_v18 = vmax.bf16 %v5278_v3, %v3705_v28 }
 0x322   : > { %v3028_v57 = vpop.f32.mrb[12].mxu1  ;;  %v3738_v15 = vmax.bf16 %v5278_v3, %v3706_v10 }
 0x323   : > { %v3030_v20 = vpop.f32.mrb[13].mxu1 }
 0x324   : > { %v3032_v23 = vpop.f32.mrb[14].mxu1  ;;  %3865 = vmatprep.subr.bf16.mxu0 %v3738_v15  ;;  %4900 = vmatprep.subr.bf16.mxu1 %v3738_v15 }
 0x325   : > { %v3163_v7 = vpack.c.bf16 %v3032_v23, %v3028_v57  ;;  %v3034_v25 = vpop.f32.mrb[15].mxu1  ;;  %3866 = vmatpush1.bf16.msra.mxu0 %v3737_v18  ;;  %4916 = vmatpush1.bf16.msra.mxu1 %v3737_v18 }
 0x326   : > { %v3164_v26 = vpack.c.bf16 %v3034_v25, %v3030_v20 }
 0x327   : > { %v3707_v33 = vadd.bf16 %v4775_v0, %v3163_v7 }
 0x328   : > { %v3708_v39 = vadd.bf16 %v4775_v0, %v3164_v26  ;;  %v4779_v0 = vcombine.low %v3400_v58, %v3412_v14  ;;  %v3508_v14 = vrot.slane %v3500_v34, %v6011_v46  ;;  %v3496_v58 = vrot.slane %v3488_v8, %v6011_v46  ;;  %v3596_v34 = vpop.permute.xlu1 %3595  ;;  %v3584_v8 = vpop.permute.xlu0 %3583 }
 0x329   : > { %v3739_v36 = vmax.bf16 %v5278_v3, %v3707_v33 }
 0x32a   : > { %v3038_v32 = vpop.f32.mrb[16].mxu1  ;;  %v3740_v24 = vmax.bf16 %v5278_v3, %v3708_v39 }
 0x32b   : > { %v3040_v22 = vpop.f32.mrb[17].mxu1 }
 0x32c   : > { %v3042_v37 = vpop.f32.mrb[18].mxu1  ;;  %3867 = vmatprep.subr.bf16.mxu0 %v3740_v24  ;;  %4901 = vmatprep.subr.bf16.mxu1 %v3740_v24 }
 0x32d   : > { %v3165_v41 = vpack.c.bf16 %v3042_v37, %v3038_v32  ;;  %v3044_v43 = vpop.f32.mrb[19].mxu1  ;;  %3868 = vmatpush1.bf16.msra.mxu0 %v3739_v36  ;;  %4917 = vmatpush1.bf16.msra.mxu1 %v3739_v36 }
 0x32e   : > { %v3166_v48 = vpack.c.bf16 %v3044_v43, %v3040_v22 }
 0x32f   : > { %v3709_v49 = vadd.bf16 %v4776_v38, %v3165_v41 }
 0x330   : > { %v3710_v9 = vadd.bf16 %v4776_v38, %v3166_v48  ;;  %v4780_v38 = vcombine.low %v3424_v63, %v3436_v5  ;;  %v3532_v5 = vrot.slane %v3524_v31, %v6011_v46  ;;  %v3520_v63 = vrot.slane %v3512_v42, %v6011_v46 }
 0x331   : > { %v3741_v52 = vmax.bf16 %v5278_v3, %v3709_v49 }
 0x332   : > { %v3048_v45 = vpop.f32.mrb[20].mxu1  ;;  %v3742_v11 = vmax.bf16 %v5278_v3, %v3710_v9 }
 0x333   : > { %v3050_v54 = vpop.f32.mrb[21].mxu1 }
 0x334   : > { %v3052_v30 = vpop.f32.mrb[22].mxu1  ;;  %3869 = vmatprep.subr.bf16.mxu0 %v3742_v11  ;;  %4902 = vmatprep.subr.bf16.mxu1 %v3742_v11 }
 0x335   : > { %v3167_v55 = vpack.c.bf16 %v3052_v30, %v3048_v45  ;;  %v3054_v56 = vpop.f32.mrb[23].mxu1  ;;  %3870 = vmatpush1.bf16.msra.mxu0 %v3741_v52  ;;  %4918 = vmatpush1.bf16.msra.mxu1 %v3741_v52 }
 0x336   : > { %v3168_v59 = vpack.c.bf16 %v3054_v56, %v3050_v54 }
 0x337   : > { %v3711_v21 = vadd.bf16 %v4777_v27, %v3167_v55 }
 0x338   : > { %v3712_v61 = vadd.bf16 %v4777_v27, %v3168_v59  ;;  %v4781_v27 = vcombine.low %v3448_v47, %v3460_v12  ;;  %v3556_v12 = vrot.slane %v3548_v51, %v6011_v46  ;;  %v3544_v47 = vrot.slane %v3536_v13, %v6011_v46  ;;  %v5212_v51 = vld [vmem:[%s6724_s5 + $0x30] ss:$8 sps:$4 sm:$0xff]  }
 0x339   : > { %v3743_v4 = vmax.bf16 %v5278_v3, %v3711_v21  ;;  %v5213_v13 = vld [vmem:[%s6724_s5 + $0x70] ss:$8 sps:$4 sm:$0xff]  }
 0x33a   : > { %v3058_v50 = vpop.f32.mrb[24].mxu1  ;;  %v3744_v1 = vmax.bf16 %v5278_v3, %v3712_v61 }
 0x33b   : > { %v3060_v2 = vpop.f32.mrb[25].mxu1 }
 0x33c   : > { %v3062_v6 = vpop.f32.mrb[26].mxu1  ;;  %3871 = vmatprep.subr.bf16.mxu0 %v3744_v1  ;;  %4903 = vmatprep.subr.bf16.mxu1 %v3744_v1 }
 0x33d   : > { %v3169_v16 = vpack.c.bf16 %v3062_v6, %v3058_v50  ;;  %v3064_v35 = vpop.f32.mrb[27].mxu1  ;;  %3872 = vmatpush1.bf16.msra.mxu0 %v3743_v4  ;;  %4919 = vmatpush1.bf16.msra.mxu1 %v3743_v4 }
 0x33e   : > { %v3170_v29 = vpack.c.bf16 %v3064_v35, %v3060_v2 }
 0x33f   : > { %v3713_v28 = vadd.bf16 %v4778_v19, %v3169_v16 }
 0x340   : > { %v3714_v10 = vadd.bf16 %v4778_v19, %v3170_v29  ;;  %v4782_v19 = vcombine.low %v3472_v53, %v3484_v62  ;;  %v3580_v62 = vrot.slane %v3572_v17, %v6011_v46  ;;  %v3568_v53 = vrot.slane %v3560_v60, %v6011_v46 }
 0x341   : > { %v3745_v18 = vmax.bf16 %v5278_v3, %v3713_v28 }
 0x342   : > { %v3068_v57 = vpop.f32.mrb[28].mxu1  ;;  %v3746_v15 = vmax.bf16 %v5278_v3, %v3714_v10 }
 0x343   : > { %v3070_v20 = vpop.f32.mrb[29].mxu1 }
 0x344   : > { %v3072_v23 = vpop.f32.mrb[30].mxu1  ;;  %3873 = vmatprep.subr.bf16.mxu0 %v3746_v15  ;;  %4904 = vmatprep.subr.bf16.mxu1 %v3746_v15 }
 0x345   : > { %v3171_v7 = vpack.c.bf16 %v3072_v23, %v3068_v57  ;;  %v3074_v25 = vpop.f32.mrb[31].mxu1  ;;  %3874 = vmatpush1.bf16.msra.mxu0 %v3745_v18  ;;  %4920 = vmatpush1.bf16.msra.mxu1 %v3745_v18 }
 0x346   : > { %v3172_v26 = vpack.c.bf16 %v3074_v25, %v3070_v20 }
 0x347   : > { %v3715_v33 = vadd.bf16 %v4779_v0, %v3171_v7 }
 0x348   : > { %v3716_v39 = vadd.bf16 %v4779_v0, %v3172_v26  ;;  %v4783_v0 = vcombine.low %v3496_v58, %v3508_v14  ;;  %v3604_v14 = vrot.slane %v3596_v34, %v6011_v46  ;;  %v3592_v58 = vrot.slane %v3584_v8, %v6011_v46 }
 0x349   : > { %v3747_v36 = vmax.bf16 %v5278_v3, %v3715_v33 }
 0x34a   : > { %v3078_v32 = vpop.f32.mrb[32].mxu1  ;;  %v3748_v24 = vmax.bf16 %v5278_v3, %v3716_v39 }
 0x34b   : > { %v3080_v22 = vpop.f32.mrb[33].mxu1 }
 0x34c   : > { %v3082_v37 = vpop.f32.mrb[34].mxu1  ;;  %3875 = vmatprep.subr.bf16.mxu0 %v3748_v24  ;;  %4905 = vmatprep.subr.bf16.mxu1 %v3748_v24 }
 0x34d   : > { %v3173_v41 = vpack.c.bf16 %v3082_v37, %v3078_v32  ;;  %v3084_v43 = vpop.f32.mrb[35].mxu1  ;;  %3876 = vmatpush1.bf16.msra.mxu0 %v3747_v36  ;;  %4921 = vmatpush1.bf16.msra.mxu1 %v3747_v36 }
 0x34e   : > { %v3174_v48 = vpack.c.bf16 %v3084_v43, %v3080_v22 }
 0x34f   : > { %v3717_v49 = vadd.bf16 %v4780_v38, %v3173_v41 }
 0x350   : > { %v3718_v9 = vadd.bf16 %v4780_v38, %v3174_v48  ;;  %v4784_v38 = vcombine.low %v3520_v63, %v3532_v5  ;;  %v5190_v5 = vld [vmem:[%s6724_s5] ss:$8 sps:$4 sm:$0xff]  }
 0x351   : > { %v3749_v52 = vmax.bf16 %v5278_v3, %v3717_v49  ;;  %v5193_v63 = vld [vmem:[%s6724_s5 + $0x40] ss:$8 sps:$4 sm:$0xff]  }
 0x352   : > { %v3088_v45 = vpop.f32.mrb[36].mxu1  ;;  %v3750_v11 = vmax.bf16 %v5278_v3, %v3718_v9 }
 0x353   : > { %v3090_v54 = vpop.f32.mrb[37].mxu1 }
 0x354   : > { %v3092_v30 = vpop.f32.mrb[38].mxu1  ;;  %3877 = vmatprep.subr.bf16.mxu0 %v3750_v11  ;;  %4906 = vmatprep.subr.bf16.mxu1 %v3750_v11 }
 0x355   : > { %v3175_v55 = vpack.c.bf16 %v3092_v30, %v3088_v45  ;;  %v3094_v56 = vpop.f32.mrb[39].mxu1  ;;  %3878 = vmatpush1.bf16.msra.mxu0 %v3749_v52  ;;  %4922 = vmatpush1.bf16.msra.mxu1 %v3749_v52 }
 0x356   : > { %v3176_v59 = vpack.c.bf16 %v3094_v56, %v3090_v54 }
 0x357   : > { %v3719_v21 = vadd.bf16 %v4781_v27, %v3175_v55 }
 0x358   : > { %v3720_v61 = vadd.bf16 %v4781_v27, %v3176_v59  ;;  %v4785_v27 = vcombine.low %v3544_v47, %v3556_v12  ;;  %v4021_v12 = vpop.permute.xlu1 %4020 }
 0x359   : > { %v3751_v4 = vmax.bf16 %v5278_v3, %v3719_v21 }
 0x35a   : > { %v3098_v50 = vpop.f32.mrb[40].mxu1  ;;  %v3752_v1 = vmax.bf16 %v5278_v3, %v3720_v61 }
 0x35b   : > { %v3100_v2 = vpop.f32.mrb[41].mxu1 }
 0x35c   : > { %v3102_v6 = vpop.f32.mrb[42].mxu1  ;;  %3879 = vmatprep.subr.bf16.mxu0 %v3752_v1  ;;  %4907 = vmatprep.subr.bf16.mxu1 %v3752_v1 }
 0x35d   : > { %v3177_v16 = vpack.c.bf16 %v3102_v6, %v3098_v50  ;;  %v3104_v35 = vpop.f32.mrb[43].mxu1  ;;  %3880 = vmatpush1.bf16.msra.mxu0 %v3751_v4  ;;  %4923 = vmatpush1.bf16.msra.mxu1 %v3751_v4 }
 0x35e   : > { %v3178_v29 = vpack.c.bf16 %v3104_v35, %v3100_v2 }
 0x35f   : > { %v3721_v28 = vadd.bf16 %v4782_v19, %v3177_v16 }
 0x360   : > { %v3722_v10 = vadd.bf16 %v4782_v19, %v3178_v29  ;;  %v4786_v19 = vcombine.low %v3568_v53, %v3580_v62 }
 0x361   : > { %v3753_v18 = vmax.bf16 %v5278_v3, %v3721_v28 }
 0x362   : > { %v3108_v57 = vpop.f32.mrb[44].mxu1  ;;  %v3754_v15 = vmax.bf16 %v5278_v3, %v3722_v10 }
 0x363   : > { %v3110_v20 = vpop.f32.mrb[45].mxu1 }
 0x364   : > { %v3112_v23 = vpop.f32.mrb[46].mxu1  ;;  %3881 = vmatprep.subr.bf16.mxu0 %v3754_v15  ;;  %4908 = vmatprep.subr.bf16.mxu1 %v3754_v15 }
 0x365   : > { %v3179_v7 = vpack.c.bf16 %v3112_v23, %v3108_v57  ;;  %v3114_v25 = vpop.f32.mrb[47].mxu1  ;;  %3882 = vmatpush1.bf16.msra.mxu0 %v3753_v18  ;;  %4924 = vmatpush1.bf16.msra.mxu1 %v3753_v18 }
 0x366   : > { %v3180_v26 = vpack.c.bf16 %v3114_v25, %v3110_v20 }
 0x367   : > { %v3723_v33 = vadd.bf16 %v4783_v0, %v3179_v7 }
 0x368   : > { %v3724_v39 = vadd.bf16 %v4783_v0, %v3180_v26  ;;  %v4787_v0 = vcombine.low %v3592_v58, %v3604_v14 }
 0x369   : > { %v3755_v36 = vmax.bf16 %v5278_v3, %v3723_v33 }
 0x36a   : > { %v3118_v32 = vpop.f32.mrb[48].mxu1  ;;  %v3756_v24 = vmax.bf16 %v5278_v3, %v3724_v39 }
 0x36b   : > { %v3120_v22 = vpop.f32.mrb[49].mxu1 }
 0x36c   : > { %v3122_v37 = vpop.f32.mrb[50].mxu1  ;;  %3883 = vmatprep.subr.bf16.mxu0 %v3756_v24  ;;  %4909 = vmatprep.subr.bf16.mxu1 %v3756_v24  ;;  %v5198_v24 = vld [vmem:[%s6724_s5 + $0x54] ss:$8 sps:$4 sm:$0xff]  }
 0x36d   : > { %v3181_v41 = vpack.c.bf16 %v3122_v37, %v3118_v32  ;;  %v3124_v43 = vpop.f32.mrb[51].mxu1  ;;  %3884 = vmatpush1.bf16.msra.mxu0 %v3755_v36  ;;  %4925 = vmatpush1.bf16.msra.mxu1 %v3755_v36  ;;  %v5196_v32 = vld [vmem:[%s6724_s5 + $0x14] ss:$8 sps:$4 sm:$0xff]   ;;  %v5200_v36 = vld [vmem:[%s6724_s5 + $0x10] ss:$8 sps:$4 sm:$0xff]  }
 0x36e   : > { %v3182_v48 = vpack.c.bf16 %v3124_v43, %v3120_v22  ;;  %v5201_v22 = vld [vmem:[%s6724_s5 + $0x50] ss:$8 sps:$4 sm:$0xff]   ;;  %v5202_v37 = vld [vmem:[%s6724_s5 + $0x24] ss:$8 sps:$4 sm:$0xff]   ;;  %v5207_v43 = vld [vmem:[%s6724_s5 + $0x60] ss:$8 sps:$4 sm:$0xff]  }
 0x36f   : > { %v3725_v49 = vadd.bf16 %v4784_v38, %v3181_v41  ;;  %v5206_v41 = vld [vmem:[%s6724_s5 + $0x20] ss:$8 sps:$4 sm:$0xff]  }
 0x370   : > { %v3726_v9 = vadd.bf16 %v4784_v38, %v3182_v48  ;;  %v5204_v38 = vld [vmem:[%s6724_s5 + $0x64] ss:$8 sps:$4 sm:$0xff]   ;;  %v5208_v48 = vld [vmem:[%s6724_s5 + $0x34] ss:$8 sps:$4 sm:$0xff]  }
 0x371   : > { %v3757_v52 = vmax.bf16 %v5278_v3, %v3725_v49  ;;  %v5210_v49 = vld [vmem:[%s6724_s5 + $0x74] ss:$8 sps:$4 sm:$0xff]  }
 0x372   : > { %v3128_v45 = vpop.f32.mrb[52].mxu1  ;;  %v3758_v11 = vmax.bf16 %v5278_v3, %v3726_v9  ;;  %v4009_v9 = vpop.permute.xlu0 %4008 }
 0x373   : > { %v3130_v54 = vpop.f32.mrb[53].mxu1  ;;  %v4017_v62 = vrot.slane %v4009_v9, %v6011_v46 }
 0x374   : > { %v3132_v30 = vpop.f32.mrb[54].mxu1  ;;  %3885 = vmatprep.subr.bf16.mxu0 %v3758_v11  ;;  %4910 = vmatprep.subr.bf16.mxu1 %v3758_v11 }
 0x375   : > { %v3183_v55 = vpack.c.bf16 %v3132_v30, %v3128_v45  ;;  %v3134_v56 = vpop.f32.mrb[55].mxu1  ;;  %3886 = vmatpush1.bf16.msra.mxu0 %v3757_v52  ;;  %4926 = vmatpush1.bf16.msra.mxu1 %v3757_v52  ;;  %v4045_v45 = vpop.permute.xlu1 %4044 }
 0x376   : > { %v3184_v59 = vpack.c.bf16 %v3134_v56, %v3130_v54  ;;  %v4033_v47 = vpop.permute.xlu0 %4032 }
 0x377   : > { %v3727_v21 = vadd.bf16 %v4785_v27, %v3183_v55 }
 0x378   : > { %v3728_v61 = vadd.bf16 %v4785_v27, %v3184_v59 }
 0x379   : > { %v3759_v4 = vmax.bf16 %v5278_v3, %v3727_v21  ;;  %v6504_v52 = vpop.permute.xlu1 %4068 }
 0x37a   : > { %v3138_v50 = vpop.f32.mrb[56].mxu1  ;;  %v3760_v1 = vmax.bf16 %v5278_v3, %v3728_v61  ;;  %v6502_v11 = vpop.permute.xlu0 %4056  ;;  %v4029_v61 = vrot.slane %v4021_v12, %v6011_v46  ;;  %v4077_v12 = vrot.slane %v6504_v52, %v6011_v46 }
 0x37b   : > { %v3140_v2 = vpop.f32.mrb[57].mxu1 }
 0x37c   : > { %v3142_v6 = vpop.f32.mrb[58].mxu1  ;;  %3887 = vmatprep.subr.bf16.mxu0 %v3760_v1  ;;  %4911 = vmatprep.subr.bf16.mxu1 %v3760_v1 }
 0x37d   : > { %v3185_v16 = vpack.c.bf16 %v3142_v6, %v3138_v50  ;;  %v3144_v35 = vpop.f32.mrb[59].mxu1  ;;  %3888 = vmatpush1.bf16.msra.mxu0 %v3759_v4  ;;  %4927 = vmatpush1.bf16.msra.mxu1 %v3759_v4  ;;  %v6508_v30 = vpop.permute.xlu1 %4092 }
 0x37e   : > { %v3186_v29 = vpack.c.bf16 %v3144_v35, %v3140_v2  ;;  %v6506_v54 = vpop.permute.xlu0 %4080  ;;  %v4804_v35 = vcombine.low %v4017_v62, %v4029_v61 }
 0x37f   : > { %v3729_v28 = vadd.bf16 %v4786_v19, %v3185_v16 }
 0x380   : > { %v3730_v10 = vadd.bf16 %v4786_v19, %v3186_v29 }
 0x381   : > { %v3761_v18 = vmax.bf16 %v5278_v3, %v3729_v28  ;;  %v6512_v55 = vpop.permute.xlu1 %4333 }
 0x382   : > { %v3148_v57 = vpop.f32.mrb[60].mxu1  ;;  %v3762_v15 = vmax.bf16 %v5278_v3, %v3730_v10  ;;  %v6510_v27 = vpop.permute.xlu0 %4328 }
 0x383   : > { %v3150_v20 = vpop.f32.mrb[61].mxu1 }
 0x384   : > { %v3152_v23 = vpop.f32.mrb[62].mxu1  ;;  %3889 = vmatprep.subr.bf16.mxu0 %v3762_v15  ;;  %4912 = vmatprep.subr.bf16.mxu1 %v3762_v15 }
 0x385   : > { %v3187_v7 = vpack.c.bf16 %v3152_v23, %v3148_v57  ;;  %v3154_v25 = vpop.f32.mrb[63].mxu1  ;;  %3890 = vmatpush1.bf16.msra.mxu0 %v3761_v18  ;;  %4928 = vmatpush1.bf16.msra.mxu1 %v3761_v18  ;;  %v6516_v59 = vpop.permute.xlu1 %4104  ;;  %v4041_v23 = vrot.slane %v4033_v47, %v6011_v46  ;;  %v4065_v47 = vrot.slane %v6502_v11, %v6011_v46 }
 0x386   : > { %v3188_v26 = vpack.c.bf16 %v3154_v25, %v3150_v20  ;;  %v6514_v56 = vpop.permute.xlu0 %4338  ;;  %v4053_v20 = vrot.slane %v4045_v45, %v6011_v46 }
 0x387   : > { %v3731_v33 = vadd.bf16 %v4787_v0, %v3187_v7 }
 0x388   : > { %v3732_v31 = vadd.bf16 %v4787_v0, %v3188_v26 }
 0x389   : > { %v3763_v39 = vmax.bf16 %v5278_v3, %v3731_v33  ;;  %v6520_v17 = vpop.permute.xlu1 %4343 }
 0x38a   : > { %v3764_v42 = vmax.bf16 %v5278_v3, %v3732_v31  ;;  %v6518_v21 = vpop.permute.xlu0 %4116 }
 0x38c   : > { %3891 = vmatprep.subr.bf16.mxu0 %v3764_v42  ;;  %4913 = vmatprep.subr.bf16.mxu1 %v3764_v42 }
 0x38d   : > { %3892 = vmatpush1.bf16.msra.mxu0 %v3763_v39  ;;  %4929 = vmatpush1.bf16.msra.mxu1 %v3763_v39  ;;  %v6526_v53 = vpop.permute.xlu1 %4128 }
 0x38e   : > { %v6522_v60 = vpop.permute.xlu0 %4348 }
 0x390   : > { %3894 = vmatmul.mubr.bf16.vlgmr.msra.gmra.mrb[128].mxu0 %v5190_v5  ;;  %3934 = vmatmul.mubr.bf16.vlgmr.msra.gmra.mrb[64].mxu1 %v5193_v63 }
 0x391   : > { %3903 = vmatprep.mubr.bf16.mxu0 %v5196_v32  ;;  %3943 = vmatprep.mubr.bf16.mxu1 %v5198_v24  ;;  %v6542_v15 = vpop.permute.xlu1 %4353  ;;  %v4805_v32 = vcombine.low %v4041_v23, %v4053_v20 }
 0x392   : > { %v6528_v50 = vpop.permute.xlu0 %4140 }
 0x396   : > { %v6544_v18 = vpop.permute.xlu0 %4358 }
 0x398   : > { %3904 = vmatmul.mubr.bf16.gmra.mrb[132].mxu0 %v5200_v36  ;;  %3944 = vmatmul.mubr.bf16.gmra.mrb[68].mxu1 %v5201_v22 }
 0x399   : > { %3913 = vmatprep.mubr.bf16.mxu0 %v5202_v37  ;;  %3953 = vmatprep.mubr.bf16.mxu1 %v5204_v38 }
 0x3a0   : > { %3914 = vmatmul.mubr.bf16.gmra.mrb[136].mxu0 %v5206_v41  ;;  %3954 = vmatmul.mubr.bf16.gmra.mrb[72].mxu1 %v5207_v43 }
 0x3a1   : > { %3923 = vmatprep.mubr.bf16.mxu0 %v5208_v48  ;;  %3963 = vmatprep.mubr.bf16.mxu1 %v5210_v49  ;;  %v6562_v49 = vpop.permute.xlu1 %4152 }
 0x3a8   : > { %3924 = vmatmul.mubr.bf16.gmra.mrb[140].mxu0 %v5212_v51  ;;  %3964 = vmatmul.mubr.bf16.gmra.mrb[76].mxu1 %v5213_v13  ;;  %v6564_v51 = vpop.permute.xlu0 %4164 }
 0x463   : > { %v3895_v1 = vpop.f32.mrb[128].mxu0  ;;  %v6530_v4 = vpop.f32.mrb[64].mxu1 }
 0x464   : > { %v3897_v2 = vpop.f32.mrb[129].mxu0  ;;  %v6532_v6 = vpop.f32.mrb[65].mxu1 }
 0x465   : > { %v3899_v19 = vpop.f32.mrb[130].mxu0  ;;  %v6534_v16 = vpop.f32.mrb[66].mxu1 }
 0x466   : > { %v3974_v29 = vpack.c.bf16 %v3899_v19, %v3895_v1  ;;  %v3982_v28 = vpack.c.bf16 %v6534_v16, %v6530_v4  ;;  %v3901_v34 = vpop.f32.mrb[131].mxu0  ;;  %v6538_v8 = vpop.f32.mrb[67].mxu1 }
 0x467   : > { %v3975_v10 = vpack.c.bf16 %v3901_v34, %v3897_v2  ;;  %v3983_v14 = vpack.c.bf16 %v6538_v8, %v6532_v6 }
 0x468   : > { %v4246_v58 = vadd.bf16 %v4804_v35, %v3974_v29 }
 0x469   : > { %v4247_v57 = vadd.bf16 %v4804_v35, %v3975_v10 }
 0x46a   : > { %v4262_v0 = vmax.bf16 %v5278_v3, %v4246_v58 }
 0x46b   : > { %v3905_v7 = vpop.f32.mrb[132].mxu0  ;;  %v6549_v25 = vpop.f32.mrb[68].mxu1  ;;  %v4263_v31 = vmax.bf16 %v5278_v3, %v4247_v57 }
 0x46c   : > { %v3907_v26 = vpop.f32.mrb[133].mxu0  ;;  %v6551_v33 = vpop.f32.mrb[69].mxu1  ;;  %v4294_v24 = vunpack.c.l.bf16 %v4262_v0  ;;  %v4296_v36 = vunpack.c.h.bf16 %v4262_v0 }
 0x46d   : > { %v3909_v42 = vpop.f32.mrb[134].mxu0  ;;  %v6554_v39 = vpop.f32.mrb[70].mxu1  ;;  %v4295_v41 = vunpack.c.l.bf16 %v4263_v31  ;;  %v4297_v43 = vunpack.c.h.bf16 %v4263_v31  ;;  %v4113_v31 = vrot.slane %v6516_v59, %v6011_v46 }
 0x46e   : > { %v3911_v5 = vpop.f32.mrb[135].mxu0  ;;  %v6556_v63 = vpop.f32.mrb[71].mxu1  ;;  %v3976_v22 = vpack.c.bf16 %v3909_v42, %v3905_v7  ;;  %v3984_v37 = vpack.c.bf16 %v6554_v39, %v6549_v25  ;;  %v4406_v62 = vmul.f32 %v6510_v27, %v4294_v24  ;;  %v4408_v1 = vmul.f32 %v6512_v55, %v4296_v36 }
 0x46f   : > { %v3977_v38 = vpack.c.bf16 %v3911_v5, %v3907_v26  ;;  %v3985_v48 = vpack.c.bf16 %v6556_v63, %v6551_v33  ;;  %v4407_v34 = vmul.f32 %v6510_v27, %v4295_v41  ;;  %v4409_v52 = vmul.f32 %v6512_v55, %v4297_v43  ;;  %v6591_v36 = vpop.permute.xlu1 %4363 }
 0x470   : > { %v4248_v13 = vadd.bf16 %v4805_v32, %v3976_v22  ;;  %v4806_v26 = vcombine.low %v4065_v47, %v4077_v12  ;;  %v4438_v42 = vadd.f32 %v4408_v1, %v4406_v62  ;;  %v4125_v27 = vrot.slane %v6518_v21, %v6011_v46  ;;  %v6593_v22 = vpop.permute.xlu0 %4368 }
 0x471   : > { %v4249_v9 = vadd.bf16 %v4805_v32, %v3977_v38  ;;  %v4459_v55 = vadd.f32 %v4409_v52, %v4407_v34 }
 0x472   : > { %v4264_v2 = vmax.bf16 %v5278_v3, %v4248_v13 }
 0x473   : > { %v3915_v45 = vpop.f32.mrb[136].mxu0  ;;  %v6570_v61 = vpop.f32.mrb[72].mxu1  ;;  %v4265_v19 = vmax.bf16 %v5278_v3, %v4249_v9 }
 0x474   : > { %v3917_v35 = vpop.f32.mrb[137].mxu0  ;;  %v6576_v29 = vpop.f32.mrb[73].mxu1  ;;  %v4298_v58 = vunpack.c.l.bf16 %v4264_v2  ;;  %v4300_v57 = vunpack.c.h.bf16 %v4264_v2 }
 0x475   : > { %v3919_v10 = vpop.f32.mrb[138].mxu0  ;;  %v6580_v11 = vpop.f32.mrb[74].mxu1  ;;  %v4299_v0 = vunpack.c.l.bf16 %v4265_v19  ;;  %v4301_v7 = vunpack.c.h.bf16 %v4265_v19 }
 0x476   : > { %v3921_v20 = vpop.f32.mrb[139].mxu0  ;;  %v6582_v23 = vpop.f32.mrb[75].mxu1  ;;  %v4410_v5 = vmul.f32 %v6514_v56, %v4298_v58  ;;  %v4412_v32 = vmul.f32 %v6520_v17, %v4300_v57  ;;  %v3978_v41 = vpack.c.bf16 %v3919_v10, %v3915_v45  ;;  %v3986_v59 = vpack.c.bf16 %v6580_v11, %v6570_v61 }
 0x477   : > { %v4411_v24 = vmul.f32 %v6514_v56, %v4299_v0  ;;  %v3979_v43 = vpack.c.bf16 %v3921_v20, %v3917_v35  ;;  %v4413_v13 = vmul.f32 %v6520_v17, %v4301_v7  ;;  %v3987_v21 = vpack.c.bf16 %v6582_v23, %v6576_v29  ;;  %v4189_v16 = vpop.permute.xlu0 %4188 }
 0x478   : > { %v4439_v38 = vadd.f32 %v4438_v42, %v4410_v5  ;;  %v4250_v62 = vadd.bf16 %v4806_v26, %v3978_v41  ;;  %v4101_v45 = vrot.slane %v6508_v30, %v6011_v46  ;;  %v4089_v35 = vrot.slane %v6506_v54, %v6011_v46 }
 0x479   : > { %v4460_v9 = vadd.f32 %v4459_v55, %v4411_v24  ;;  %v4251_v1 = vadd.bf16 %v4806_v26, %v3979_v43  ;;  %v4808_v10 = vcombine.low %v4113_v31, %v4125_v27  ;;  %v4149_v26 = vrot.slane %v6528_v50, %v6011_v46 }
 0x47a   : > { %v4440_v56 = vadd.f32 %v4439_v38, %v4412_v32  ;;  %v4266_v58 = vmax.bf16 %v5278_v3, %v4250_v62  ;;  %v4137_v31 = vrot.slane %v6526_v53, %v6011_v46  ;;  %v4807_v38 = vcombine.low %v4089_v35, %v4101_v45 }
 0x47b   : > { %v3925_v12 = vpop.f32.mrb[140].mxu0  ;;  %v6600_v47 = vpop.f32.mrb[76].mxu1  ;;  %v4461_v17 = vadd.f32 %v4460_v9, %v4413_v13  ;;  %v4267_v57 = vmax.bf16 %v5278_v3, %v4251_v1  ;;  %v4254_v55 = vadd.bf16 %v4808_v10, %v3982_v28  ;;  %v4255_v50 = vadd.bf16 %v4808_v10, %v3983_v14 }
 0x47c   : > { %v3927_v2 = vpop.f32.mrb[141].mxu0  ;;  %v6602_v19 = vpop.f32.mrb[77].mxu1  ;;  %v4302_v5 = vunpack.c.l.bf16 %v4266_v58  ;;  %v4304_v27 = vunpack.c.h.bf16 %v4266_v58  ;;  %v4809_v43 = vcombine.low %v4137_v31, %v4149_v26  ;;  %v4161_v13 = vrot.slane %v6562_v49, %v6011_v46 }
 0x47d   : > { %v3929_v34 = vpop.f32.mrb[142].mxu0  ;;  %v6608_v52 = vpop.f32.mrb[78].mxu1  ;;  %v4303_v32 = vunpack.c.l.bf16 %v4267_v57  ;;  %v4305_v24 = vunpack.c.h.bf16 %v4267_v57  ;;  %v4173_v53 = vrot.slane %v6564_v51, %v6011_v46 }
 0x47e   : > { %v3980_v20 = vpack.c.bf16 %v3929_v34, %v3925_v12  ;;  %v3931_v0 = vpop.f32.mrb[143].mxu0  ;;  %v6612_v7 = vpop.f32.mrb[79].mxu1  ;;  %v3988_v30 = vpack.c.bf16 %v6608_v52, %v6600_v47  ;;  %v4414_v41 = vmul.f32 %v6522_v60, %v4302_v5  ;;  %v4416_v28 = vmul.f32 %v6542_v15, %v4304_v27 }
 0x47f   : > { %v3981_v54 = vpack.c.bf16 %v3931_v0, %v3927_v2  ;;  %v3989_v42 = vpack.c.bf16 %v6612_v7, %v6602_v19  ;;  %v4177_v9 = vpop.permute.xlu1 %4176  ;;  %v4415_v4 = vmul.f32 %v6522_v60, %v4303_v32  ;;  %v4270_v12 = vmax.bf16 %v5278_v3, %v4254_v55  ;;  %v4379_v27 = vpop.permute.xlu0 %4378 }
 0x480   : > { %v4441_v6 = vadd.f32 %v4440_v56, %v4414_v41  ;;  %v4252_v8 = vadd.bf16 %v4807_v38, %v3980_v20  ;;  %v4271_v47 = vmax.bf16 %v5278_v3, %v4255_v50  ;;  %v4417_v62 = vmul.f32 %v6542_v15, %v4305_v24 }
 0x481   : > { %v4253_v14 = vadd.bf16 %v4807_v38, %v3981_v54  ;;  %v4462_v1 = vadd.f32 %v4461_v17, %v4415_v4  ;;  %v4256_v49 = vadd.bf16 %v4809_v43, %v3984_v37  ;;  %v4197_v56 = vrot.slane %v4189_v16, %v6011_v46 }
 0x482   : > { %v4442_v51 = vadd.f32 %v4441_v6, %v4416_v28  ;;  %v4268_v60 = vmax.bf16 %v5278_v3, %v4252_v8  ;;  %v4257_v45 = vadd.bf16 %v4809_v43, %v3985_v48  ;;  %v4810_v34 = vcombine.low %v4161_v13, %v4173_v53 }
 0x483   : > { %v4269_v2 = vmax.bf16 %v5278_v3, %v4253_v14  ;;  %v4463_v35 = vadd.f32 %v4462_v1, %v4417_v62  ;;  %v4185_v15 = vrot.slane %v4177_v9, %v6011_v46  ;;  %v4374_v10 = vpop.permute.xlu1 %4373  ;;  %v4310_v25 = vunpack.c.l.bf16 %v4270_v12  ;;  %v4389_v6 = vpop.permute.xlu0 %4388 }
 0x484   : > { %v4306_v17 = vunpack.c.l.bf16 %v4268_v60  ;;  %v4308_v52 = vunpack.c.h.bf16 %v4268_v60  ;;  %v4311_v39 = vunpack.c.l.bf16 %v4271_v47  ;;  %v4272_v57 = vmax.bf16 %v5278_v3, %v4256_v49 }
 0x485   : > { %v4307_v37 = vunpack.c.l.bf16 %v4269_v2  ;;  %v4309_v58 = vunpack.c.h.bf16 %v4269_v2  ;;  %v4258_v20 = vadd.bf16 %v4810_v34, %v3986_v59  ;;  %v4811_v63 = vcombine.low %v4185_v15, %v4197_v56 }
 0x486   : > { %v4418_v33 = vmul.f32 %v6544_v18, %v4306_v17  ;;  %v4273_v48 = vmax.bf16 %v5278_v3, %v4257_v45  ;;  %v4259_v46 = vadd.bf16 %v4810_v34, %v3987_v21  ;;  %v4312_v26 = vunpack.c.h.bf16 %v4270_v12 }
 0x487   : > { %v4419_v0 = vmul.f32 %v6544_v18, %v4307_v37  ;;  %v4313_v54 = vunpack.c.h.bf16 %v4271_v47  ;;  %v4420_v31 = vmul.f32 %v6591_v36, %v4308_v52  ;;  %v4422_v61 = vmul.f32 %v6593_v22, %v4310_v25  ;;  %v4384_v21 = vpop.permute.xlu1 %4383 }
 0x488   : > { %v4443_v5 = vadd.f32 %v4442_v51, %v4418_v33  ;;  %v4423_v11 = vmul.f32 %v6593_v22, %v4311_v39  ;;  %v4421_v59 = vmul.f32 %v6591_v36, %v4309_v58  ;;  %v4314_v50 = vunpack.c.l.bf16 %v4272_v57 }
 0x489   : > { %v4464_v55 = vadd.f32 %v4463_v35, %v4419_v0  ;;  %v4274_v32 = vmax.bf16 %v5278_v3, %v4258_v20  ;;  %v4260_v23 = vadd.bf16 %v4811_v63, %v3988_v30  ;;  %v4315_v18 = vunpack.c.l.bf16 %v4273_v48 }
 0x48a   : > { %v4444_v29 = vadd.f32 %v4443_v5, %v4420_v31  ;;  %v4275_v24 = vmax.bf16 %v5278_v3, %v4259_v46  ;;  %v4261_v41 = vadd.bf16 %v4811_v63, %v3989_v42  ;;  %v4424_v43 = vmul.f32 %v4374_v10, %v4312_v26 }
 0x48b   : > { %v4465_v38 = vadd.f32 %v4464_v55, %v4421_v59  ;;  %v4316_v13 = vunpack.c.h.bf16 %v4272_v57  ;;  %v4425_v53 = vmul.f32 %v4374_v10, %v4313_v54  ;;  %v4317_v36 = vunpack.c.h.bf16 %v4273_v48  ;;  %v4394_v42 = vpop.permute.xlu1 %4393  ;;  %v4399_v10 = vpop.permute.xlu0 %4398 }
 0x48c   : > { %v4445_v22 = vadd.f32 %v4444_v29, %v4422_v61  ;;  %v4426_v4 = vmul.f32 %v4379_v27, %v4314_v50  ;;  %v4318_v16 = vunpack.c.l.bf16 %v4274_v32  ;;  %v4276_v30 = vmax.bf16 %v5278_v3, %v4260_v23 }
 0x48d   : > { %v4466_v9 = vadd.f32 %v4465_v38, %v4423_v11  ;;  %v4427_v8 = vmul.f32 %v4379_v27, %v4315_v18  ;;  %v4319_v14 = vunpack.c.l.bf16 %v4275_v24  ;;  %v4277_v47 = vmax.bf16 %v5278_v3, %v4261_v41 }
 0x48e   : > { %v4446_v28 = vadd.f32 %v4445_v22, %v4424_v43  ;;  %v4428_v62 = vmul.f32 %v4384_v21, %v4316_v13  ;;  %v4320_v19 = vunpack.c.h.bf16 %v4274_v32  ;;  %v4429_v1 = vmul.f32 %v4384_v21, %v4317_v36 }
 0x48f   : > { %v4467_v12 = vadd.f32 %v4466_v9, %v4425_v53  ;;  %v4321_v49 = vunpack.c.h.bf16 %v4275_v24  ;;  %v4430_v60 = vmul.f32 %v4389_v6, %v4318_v16  ;;  %v4322_v2 = vunpack.c.l.bf16 %v4276_v30  ;;  %v4404_v57 = vpop.permute.xlu1 %4403  ;;  %v4484_v23 = vpop.permute.xlu0 %4483 }
 0x490   : > { %v4447_v7 = vadd.f32 %v4446_v28, %v4426_v4  ;;  %v4431_v45 = vmul.f32 %v4389_v6, %v4319_v14  ;;  %v4323_v35 = vunpack.c.l.bf16 %v4277_v47  ;;  %v4432_v15 = vmul.f32 %v4394_v42, %v4320_v19 }
 0x491   : > { %v4468_v51 = vadd.f32 %v4467_v12, %v4427_v8  ;;  %v4324_v17 = vunpack.c.h.bf16 %v4276_v30  ;;  %v4433_v25 = vmul.f32 %v4394_v42, %v4321_v49  ;;  %v4325_v39 = vunpack.c.h.bf16 %v4277_v47 }
 0x492   : > { %v4448_v56 = vadd.f32 %v4447_v7, %v4428_v62  ;;  %v4434_v37 = vmul.f32 %v4399_v10, %v4322_v2  ;;  %v4435_v20 = vmul.f32 %v4399_v10, %v4323_v35  ;;  %v5280_v55 = vmov 1966171168  }
 0x493   : > { %v4469_v34 = vadd.f32 %v4468_v51, %v4429_v1  ;;  %v4436_v63 = vmul.f32 %v4404_v57, %v4324_v17  ;;  %v4437_v46 = vmul.f32 %v4404_v57, %v4325_v39  ;;  %v4496_v50 = vunpack.c.l.s4 %v5280_v55 }
 0x494   : > { %v4449_v52 = vadd.f32 %v4448_v56, %v4430_v60  ;;  %v4488_v32 = vsub.s32 0, %v6006_v44 }
 0x495   : > { %v4470_v3 = vadd.f32 %v4469_v34, %v4431_v45  ;;  %v4497_v38 = vunpack.c.0.s8 %v4496_v50 }
 0x496   : > { %v4450_v58 = vadd.f32 %v4449_v52, %v4432_v15  ;;  %v4489_v41 = vrot.slane %v4484_v23, %v4488_v32 }
 0x497   : > { %v4471_v33 = vadd.f32 %v4470_v3, %v4433_v25  ;;  %v4500_v36 = vsub.s32 %v4497_v38, %v6006_v44 }
 0x498   : > { %v4451_v48 = vadd.f32 %v4450_v58, %v4434_v37 }
 0x499   : > { %v4472_v0 = vadd.f32 %v4471_v33, %v4435_v20 }
 0x49a   : > { %v4452_v26 = vadd.f32 %v4451_v48, %v4436_v63 }
 0x49b   : > { %v4473_v54 = vadd.f32 %v4472_v0, %v4437_v46 }
 0x49c   : > { %v4453_v31 = vrot.slane %v4452_v26, 4 }
 0x49d   : > { %v4474_v5 = vrot.slane %v4473_v54, 4 }
 0x49e   : > { %v4454_v27 = vadd.f32 %v4453_v31, %v4452_v26 }
 0x49f   : > { %v4475_v61 = vadd.f32 %v4474_v5, %v4473_v54 }
 0x4a0   : > { %v4455_v11 = vrot.slane %v4454_v27, 2 }
 0x4a1   : > { %v4476_v59 = vrot.slane %v4475_v61, 2 }
 0x4a2   : > { %v4456_v29 = vadd.f32 %v4455_v11, %v4454_v27 }
 0x4a3   : > { %v4477_v21 = vadd.f32 %v4476_v59, %v4475_v61 }
 0x4a4   : > { %v4457_v18 = vrot.slane %v4456_v29, 1 }
 0x4a5   : > { %v4478_v24 = vrot.slane %v4477_v21, 1 }
 0x4a6   : > { %v4458_v43 = vadd.f32 %v4457_v18, %v4456_v29 }
 0x4a7   : > { %v4479_v13 = vadd.f32 %v4478_v24, %v4477_v21 }
 0x4a8   : > { %v4490_v22 = vadd.f32 %v4489_v41, %v4458_v43 }
 0x4a9   : > { %v4491_v53 = vadd.f32 %v4489_v41, %v4479_v13 }
 0x4ab   : > { %v4494_v9 = vcombine.low %v4490_v22, %v4491_v53 }
 0x4ad   : > { %v4501_v4 = vrot.slane %v4494_v9, %v4500_v36 }
 0x4af   : > { %v4508_v16 = vrot.slane %v4501_v4, %v4500_v36 }
 0x4b1   : > { %4514 = vst.msk [vmem:[%s328_s15] sm:$0x3] %vm4512_vm1, %v4508_v16 }
 0x4b2   : > { %5227 = shalt.err (!%p5224_p3)
}
 0x4b3   : > { %s5228_s26 = scalar_lea.hbm %s6677_s23, 32  ;;  %s5232_s8 = scalar_lea.hbm %s6728_s9, 64 }
 0x4b4   : > { %p5229_p4 = scmp.ne.s32.totalorder %s6677_s23, %s5228_s26  ;;  %p5233_p9 = scmp.lt.u32.totalorder %s6677_s23, %s6728_s9 }
 0x4b5   : > { %p5234_p10 = scmp.lt.u32.totalorder %s5232_s8, %s5228_s26  ;;  %p5236_p12 = scmp.lt.u32.totalorder %s5228_s26, %s6677_s23 }
 0x4b6   : > { %p5230_p7 = pnand %p5229_p4, %p5370_p5 }
 0x4b7   : > { %p5235_p11 = por %p5234_p10, %p5233_p9 }
 0x4b8   : > { %p5231_p8 = pneg %p5230_p7 }
 0x4b9   : > { %p5237_p13 = por %p5236_p12, %p5235_p11 }
 0x4bb   : > { %p5238_p0 = pnand %p5237_p13, %p5231_p8 }
 0x4bd   : > { %5241 = shalt.err (!%p5238_p0)
}
 0x4be   : > { %5002 = dma.vmem_to_hbm [thread:$0]  (%p5370_p5), %s6679_s17, 32, %s6677_s23, %s4516_s24  }
 0x4bf PF: > { %p5008_p1 = scmp.ge.s32.totalorder %s5276_s14, 2  ;;  %s4542_s22 = sand.u32 1, %s5264_s11  }
 0x4c0   : > { %s4543_s28 = scalar_lea.sflag [#allocation4], %s4542_s22 }
 0x4c1   : > { %p5005_p2 = pnand %p5008_p1, %p5374_p6 }
 0x4c3   : > { %5259 = dma.done.wait (!%p5005_p2), %s4543_s28, 32  }
 0x4c4   : > { %5261 = vsyncadd (!%p5005_p2), %s4543_s28, 4294967264  ;;  %p21_p3 = scmp.ge.s32.totalorder %s5358_s16, 4   ;;  %s6731_s11 = smov %s5268_s12 }
 0x4c5   : > { %s6732_s12 = smov %s5272_s13  ;;  %s6733_s13 = smov %s5368_s19 }
 0x4c6   : > { %s6734_s14 = smov %s5358_s16  ;;  %23 = sbr.rel (!%p21_p3) target bundleno = 6 (0x6), region = 91 }
 0x4cd   :  { %4548 = vsyncpa [#allocation4], 1 }
 0x4ce   :  { %4550 = vsyncpa [#allocation4 + $0x1], 1 }

</bundles_post_ra>
